<compile_context>
chip_gen: v7x
topology: tpu7x:2x2x1
jax: 0.10.0
libtpu: 0.0.40
codegen_flags: <defaults>
</compile_context>

<pallas_src>
import functools

import jax
import jax.numpy as jnp
from jax.experimental import pallas as pl
from jax.experimental.pallas import tpu as pltpu


def _convlstm_kernel(x_ref, w_ref, cprev_ref, wci_ref, wcf_ref, wco_ref,
                     h_ref, c_ref, slab_ref,
                     *, N, Ct, K, Wp, HWw, Cout, activation):
    """Single-step ConvLSTM cell; the whole batch is one grid step.

    x_ref    : (N, Ct, Lp)         padded concat([X, H_prev]), flattened spatial
                                   on the lane axis (Lp = (H+2p+1)*Wp)
    w_ref    : (4*Cout, Ct*K*K+1)  conv weight slab, tap-major (kh,kw,ci) columns
                                   + bias column
    cprev_ref: (Cout, N*HWw)       previous cell state, wide layout
    wci/wcf/wco_ref: (Cout, N*HWw) peephole weights, wide layout (tiled over N)
    h_ref, c_ref: (Cout, N*HWw)    outputs, wide layout
    slab_ref : (Ct*K*K+1, N*HWw)   VMEM scratch: im2col patches + ones row
    """
    CtKK = Ct * K * K

    # ---- build the im2col slab in VMEM (no HBM round trip) -----------------
    # Wide-output trick: output column j = h*Wp + w reads flat input index
    # j + kh*Wp + kw for tap (kh, kw) -- a constant offset -- so each tap is a
    # single contiguous static lane slice of the padded input.
    for n in range(N):
        x_n = x_ref[n]                                         # (Ct, Lp)
        for t in range(K * K):
            kh, kw = divmod(t, K)
            off = kh * Wp + kw
            slab_ref[t * Ct:(t + 1) * Ct, n * HWw:(n + 1) * HWw] = (
                x_n[:, off:off + HWw].astype(slab_ref.dtype))
    # Bias folded into the matmul as an extra all-ones contraction row.
    slab_ref[CtKK:CtKK + 1, :] = jnp.ones((1, N * HWw), slab_ref.dtype)

    # ---- whole "same" conv + bias as ONE MXU matmul -------------------------
    conv = jnp.dot(w_ref[...], slab_ref[...],
                   preferred_element_type=jnp.float32)         # (4*Cout, N*HWw)

    # torch.chunk(conv_output, 4, dim=1) == sublane quarters (Cout % 8 == 0).
    i_conv = conv[0 * Cout:1 * Cout]
    f_conv = conv[1 * Cout:2 * Cout]
    c_conv = conv[2 * Cout:3 * Cout]
    o_conv = conv[3 * Cout:4 * Cout]

    c_prev = cprev_ref[...].astype(jnp.float32)
    w_ci = wci_ref[...].astype(jnp.float32)
    w_cf = wcf_ref[...].astype(jnp.float32)
    w_co = wco_ref[...].astype(jnp.float32)

    if activation == "tanh":
        act = jnp.tanh
    else:  # "relu"
        act = lambda v: jnp.maximum(v, 0.0)

    input_gate = jax.nn.sigmoid(i_conv + w_ci * c_prev)
    forget_gate = jax.nn.sigmoid(f_conv + w_cf * c_prev)
    c_new = forget_gate * c_prev + input_gate * act(c_conv)
    output_gate = jax.nn.sigmoid(o_conv + w_co * c_new)
    h_new = output_gate * act(c_new)

    h_ref[...] = h_new.astype(h_ref.dtype)
    c_ref[...] = c_new.astype(c_ref.dtype)


def convlstm_cell(X, H_prev, C_prev, conv_w, conv_b, W_ci, W_cf, W_co,
                  *, kernel_size, padding, activation="tanh", mxu_dtype=None):
    """Inputs/outputs follow the PyTorch module (NCHW)."""
    N, Cin, Hh, Ww = X.shape
    Cout = H_prev.shape[1]
    K, p = kernel_size, padding
    Ct = Cin + Cout
    assert 2 * p == K - 1, "ConvLSTMCell requires same-padding conv"
    Hp, Wp = Hh + 2 * p, Ww + 2 * p
    HWw = Hh * Wp                      # wide output columns per batch element
    Lp = (Hp + 1) * Wp                 # +1 guard row keeps every tap slice in-bounds
    CtKK = Ct * K * K

    # ---- cheap layout glue (no im2col, no big HBM slabs) --------------------
    x = jnp.concatenate([X, H_prev], axis=1)                   # (N, Ct, H, W)
    xp = jnp.pad(x, ((0, 0), (0, 0), (p, p + 1), (p, p)))      # (N, Ct, Hp+1, Wp)
    xflat = xp.reshape(N, Ct, Lp)

    # Weight slab: tap-major (kh, kw, ci) columns to match the in-kernel slab
    # row order, plus the bias as an extra contraction column.
    wslab = jnp.concatenate(
        [conv_w.transpose(0, 2, 3, 1).reshape(4 * Cout, CtKK),
         conv_b.reshape(4 * Cout, 1)], axis=1)                 # (4*Cout, CtKK+1)

    # Wide layout (lane index = n*HWw + h*Wp + w) for state / peepholes.
    def widen_state(a):                # (N, Cout, H, W) -> (Cout, N*HWw)
        aw = jnp.pad(a, ((0, 0), (0, 0), (0, 0), (0, Wp - Ww)))
        return aw.transpose(1, 0, 2, 3).reshape(Cout, N * HWw)

    def widen_peep(a):                 # (Cout, H, W) -> (Cout, N*HWw)
        aw = jnp.pad(a, ((0, 0), (0, 0), (0, Wp - Ww))).reshape(Cout, 1, HWw)
        return jnp.broadcast_to(aw, (Cout, N, HWw)).reshape(Cout, N * HWw)

    cprev_w = widen_state(C_prev)
    wci_w, wcf_w, wco_w = map(widen_peep, (W_ci, W_cf, W_co))

    if mxu_dtype is not None:          # e.g. jnp.bfloat16 on v6e/v7x
        xflat = xflat.astype(mxu_dtype)
        wslab = wslab.astype(mxu_dtype)
    slab_dtype = xflat.dtype

    kern = functools.partial(
        _convlstm_kernel, N=N, Ct=Ct, K=K, Wp=Wp, HWw=HWw, Cout=Cout,
        activation=activation)

    h_out, c_out = pl.pallas_call(
        kern,
        out_shape=(jax.ShapeDtypeStruct((Cout, N * HWw), X.dtype),
                   jax.ShapeDtypeStruct((Cout, N * HWw), X.dtype)),
        grid_spec=pltpu.PrefetchScalarGridSpec(
            num_scalar_prefetch=0,
            grid=(1,),                 # whole batch folded into one step
            in_specs=[
                pl.BlockSpec((N, Ct, Lp), lambda i: (0, 0, 0)),
                pl.BlockSpec((4 * Cout, CtKK + 1), lambda i: (0, 0)),
                pl.BlockSpec((Cout, N * HWw), lambda i: (0, 0)),
                pl.BlockSpec((Cout, N * HWw), lambda i: (0, 0)),
                pl.BlockSpec((Cout, N * HWw), lambda i: (0, 0)),
                pl.BlockSpec((Cout, N * HWw), lambda i: (0, 0)),
            ],
            out_specs=(pl.BlockSpec((Cout, N * HWw), lambda i: (0, 0)),
                       pl.BlockSpec((Cout, N * HWw), lambda i: (0, 0))),
            scratch_shapes=[pltpu.VMEM((CtKK + 1, N * HWw), slab_dtype)],
        ),
        compiler_params=pltpu.CompilerParams(
            dimension_semantics=("arbitrary",)),
    )(xflat, wslab, cprev_w, wci_w, wcf_w, wco_w)

    # Drop the 2p garbage columns per wide row and go back to NCHW.
    def unwiden(a):                    # (Cout, N*HWw) -> (N, Cout, H, W)
        return a.reshape(Cout, N, Hh, Wp)[:, :, :, :Ww].transpose(1, 0, 2, 3)

    return unwiden(h_out), unwiden(c_out)


def _reference(X, H_prev, C_prev, conv_w, conv_b, W_ci, W_cf, W_co, padding):
    """Pure-JAX reference mirroring the PyTorch forward (NCHW)."""
    inp = jnp.concatenate([X, H_prev], axis=1)
    conv = jax.lax.conv_general_dilated(
        inp, conv_w, window_strides=(1, 1),
        padding=[(padding, padding), (padding, padding)],
        dimension_numbers=("NCHW", "OIHW", "NCHW"),
        precision=jax.lax.Precision.HIGHEST)
    conv = conv + conv_b[None, :, None, None]
    i_c, f_c, c_c, o_c = jnp.split(conv, 4, axis=1)
    ig = jax.nn.sigmoid(i_c + W_ci * C_prev)
    fg = jax.nn.sigmoid(f_c + W_cf * C_prev)
    C = fg * C_prev + ig * jnp.tanh(c_c)
    og = jax.nn.sigmoid(o_c + W_co * C)
    return og * jnp.tanh(C), C


if __name__ == "__main__":
    # Small shapes consistent with the module.
    batch = 2
    in_channels = 4
    out_channels = 8
    kernel_size = 3
    padding = 1
    frame_size = (16, 16)
    Hh, Ww = frame_size

    key = jax.random.PRNGKey(0)
    ks = jax.random.split(key, 8)
    X = jax.random.normal(ks[0], (batch, in_channels, Hh, Ww), jnp.float32)
    H_prev = jax.random.normal(ks[1], (batch, out_channels, Hh, Ww), jnp.float32)
    C_prev = jax.random.normal(ks[2], (batch, out_channels, Hh, Ww), jnp.float32)

    # Deterministic parameter init (shapes from the module's __init__).
    conv_w = 0.1 * jax.random.normal(
        ks[3], (4 * out_channels, in_channels + out_channels,
                kernel_size, kernel_size), jnp.float32)
    conv_b = 0.1 * jax.random.normal(ks[4], (4 * out_channels,), jnp.float32)
    W_ci = 0.1 * jax.random.normal(ks[5], (out_channels, Hh, Ww), jnp.float32)
    W_cf = 0.1 * jax.random.normal(ks[6], (out_channels, Hh, Ww), jnp.float32)
    W_co = 0.1 * jax.random.normal(ks[7], (out_channels, Hh, Ww), jnp.float32)

    H_new, C_new = convlstm_cell(
        X, H_prev, C_prev, conv_w, conv_b, W_ci, W_cf, W_co,
        kernel_size=kernel_size, padding=padding, activation="tanh")
    jax.block_until_ready((H_new, C_new))

    # Sanity check against a pure-JAX reference.
    H_ref, C_ref = _reference(X, H_prev, C_prev, conv_w, conv_b,
                              W_ci, W_cf, W_co, padding)
    assert jnp.allclose(H_new, H_ref, atol=1e-2, rtol=1e-2)
    assert jnp.allclose(C_new, C_ref, atol=1e-2, rtol=1e-2)

    print("KERNEL_OK")
</pallas_src>

<mosaic_0001>
module attributes {stable_mosaic.version = 11 : i64} {
  func.func @_convlstm_kernel(%arg0: i32, %arg1: memref<2x12x342xf32, #tpu.memory_space<vmem>>, %arg2: memref<32x109xf32, #tpu.memory_space<vmem>>, %arg3: memref<8x576xf32, #tpu.memory_space<vmem>>, %arg4: memref<8x576xf32, #tpu.memory_space<vmem>>, %arg5: memref<8x576xf32, #tpu.memory_space<vmem>>, %arg6: memref<8x576xf32, #tpu.memory_space<vmem>>, %arg7: memref<8x576xf32, #tpu.memory_space<vmem>>, %arg8: memref<8x576xf32, #tpu.memory_space<vmem>>, %arg9: memref<109x576xf32, #tpu.memory_space<vmem>>) attributes {dimension_semantics = [#tpu.dimension_semantics<arbitrary>], iteration_bounds = array<i64: 1>, scalar_prefetch = 0 : i64, scratch_operands = 1 : i64, tpu.core_type = #tpu.core_type<tc>, window_params = [{pipeline_mode = #tpu.pipeline_mode<synchronous>, transform_indices = @transform_0, window_bounds = array<i64: 2, 12, 342>}, {pipeline_mode = #tpu.pipeline_mode<synchronous>, transform_indices = @transform_1, window_bounds = array<i64: 32, 109>}, {pipeline_mode = #tpu.pipeline_mode<synchronous>, transform_indices = @transform_2, window_bounds = array<i64: 8, 576>}, {pipeline_mode = #tpu.pipeline_mode<synchronous>, transform_indices = @transform_3, window_bounds = array<i64: 8, 576>}, {pipeline_mode = #tpu.pipeline_mode<synchronous>, transform_indices = @transform_4, window_bounds = array<i64: 8, 576>}, {pipeline_mode = #tpu.pipeline_mode<synchronous>, transform_indices = @transform_5, window_bounds = array<i64: 8, 576>}, {pipeline_mode = #tpu.pipeline_mode<synchronous>, transform_indices = @transform_6, window_bounds = array<i64: 8, 576>}, {pipeline_mode = #tpu.pipeline_mode<synchronous>, transform_indices = @transform_7, window_bounds = array<i64: 8, 576>}]} {
    %c0 = arith.constant 0 : index
    %c0_0 = arith.constant 0 : index
    %c0_1 = arith.constant 0 : index
    %0 = vector.load %arg1[%c0, %c0_0, %c0_1] : memref<2x12x342xf32, #tpu.memory_space<vmem>>, vector<1x12x342xf32>
    %1 = vector.shape_cast %0 : vector<1x12x342xf32> to vector<12x342xf32>
    %2 = vector.extract_strided_slice %1 {offsets = [0, 0], sizes = [12, 288], strides = [1, 1]} : vector<12x342xf32> to vector<12x288xf32>
    %c0_2 = arith.constant 0 : index
    %c0_3 = arith.constant 0 : index
    %3 = vector.load %arg9[%c0_2, %c0_3] : memref<109x576xf32, #tpu.memory_space<vmem>>, vector<12x288xf32>
    tpu.vector_store %arg9[%c0_2, %c0_3], %2 {strides = array<i32>} : memref<109x576xf32, #tpu.memory_space<vmem>>, vector<12x288xf32>,
    %4 = vector.extract_strided_slice %1 {offsets = [0, 1], sizes = [12, 288], strides = [1, 1]} : vector<12x342xf32> to vector<12x288xf32>
    %c12 = arith.constant 12 : index
    %c0_4 = arith.constant 0 : index
    %5 = vector.load %arg9[%c12, %c0_4] : memref<109x576xf32, #tpu.memory_space<vmem>>, vector<12x288xf32>
    tpu.vector_store %arg9[%c12, %c0_4], %4 {strides = array<i32>} : memref<109x576xf32, #tpu.memory_space<vmem>>, vector<12x288xf32>,
    %6 = vector.extract_strided_slice %1 {offsets = [0, 2], sizes = [12, 288], strides = [1, 1]} : vector<12x342xf32> to vector<12x288xf32>
    %c24 = arith.constant 24 : index
    %c0_5 = arith.constant 0 : index
    %7 = vector.load %arg9[%c24, %c0_5] : memref<109x576xf32, #tpu.memory_space<vmem>>, vector<12x288xf32>
    tpu.vector_store %arg9[%c24, %c0_5], %6 {strides = array<i32>} : memref<109x576xf32, #tpu.memory_space<vmem>>, vector<12x288xf32>,
    %8 = vector.extract_strided_slice %1 {offsets = [0, 18], sizes = [12, 288], strides = [1, 1]} : vector<12x342xf32> to vector<12x288xf32>
    %c36 = arith.constant 36 : index
    %c0_6 = arith.constant 0 : index
    %9 = vector.load %arg9[%c36, %c0_6] : memref<109x576xf32, #tpu.memory_space<vmem>>, vector<12x288xf32>
    tpu.vector_store %arg9[%c36, %c0_6], %8 {strides = array<i32>} : memref<109x576xf32, #tpu.memory_space<vmem>>, vector<12x288xf32>,
    %10 = vector.extract_strided_slice %1 {offsets = [0, 19], sizes = [12, 288], strides = [1, 1]} : vector<12x342xf32> to vector<12x288xf32>
    %c48 = arith.constant 48 : index
    %c0_7 = arith.constant 0 : index
    %11 = vector.load %arg9[%c48, %c0_7] : memref<109x576xf32, #tpu.memory_space<vmem>>, vector<12x288xf32>
    tpu.vector_store %arg9[%c48, %c0_7], %10 {strides = array<i32>} : memref<109x576xf32, #tpu.memory_space<vmem>>, vector<12x288xf32>,
    %12 = vector.extract_strided_slice %1 {offsets = [0, 20], sizes = [12, 288], strides = [1, 1]} : vector<12x342xf32> to vector<12x288xf32>
    %c60 = arith.constant 60 : index
    %c0_8 = arith.constant 0 : index
    %13 = vector.load %arg9[%c60, %c0_8] : memref<109x576xf32, #tpu.memory_space<vmem>>, vector<12x288xf32>
    tpu.vector_store %arg9[%c60, %c0_8], %12 {strides = array<i32>} : memref<109x576xf32, #tpu.memory_space<vmem>>, vector<12x288xf32>,
    %14 = vector.extract_strided_slice %1 {offsets = [0, 36], sizes = [12, 288], strides = [1, 1]} : vector<12x342xf32> to vector<12x288xf32>
    %c72 = arith.constant 72 : index
    %c0_9 = arith.constant 0 : index
    %15 = vector.load %arg9[%c72, %c0_9] : memref<109x576xf32, #tpu.memory_space<vmem>>, vector<12x288xf32>
    tpu.vector_store %arg9[%c72, %c0_9], %14 {strides = array<i32>} : memref<109x576xf32, #tpu.memory_space<vmem>>, vector<12x288xf32>,
    %16 = vector.extract_strided_slice %1 {offsets = [0, 37], sizes = [12, 288], strides = [1, 1]} : vector<12x342xf32> to vector<12x288xf32>
    %c84 = arith.constant 84 : index
    %c0_10 = arith.constant 0 : index
    %17 = vector.load %arg9[%c84, %c0_10] : memref<109x576xf32, #tpu.memory_space<vmem>>, vector<12x288xf32>
    tpu.vector_store %arg9[%c84, %c0_10], %16 {strides = array<i32>} : memref<109x576xf32, #tpu.memory_space<vmem>>, vector<12x288xf32>,
    %18 = vector.extract_strided_slice %1 {offsets = [0, 38], sizes = [12, 288], strides = [1, 1]} : vector<12x342xf32> to vector<12x288xf32>
    %c96 = arith.constant 96 : index
    %c0_11 = arith.constant 0 : index
    %19 = vector.load %arg9[%c96, %c0_11] : memref<109x576xf32, #tpu.memory_space<vmem>>, vector<12x288xf32>
    tpu.vector_store %arg9[%c96, %c0_11], %18 {strides = array<i32>} : memref<109x576xf32, #tpu.memory_space<vmem>>, vector<12x288xf32>,
    %c1 = arith.constant 1 : index
    %c0_12 = arith.constant 0 : index
    %c0_13 = arith.constant 0 : index
    %20 = vector.load %arg1[%c1, %c0_12, %c0_13] : memref<2x12x342xf32, #tpu.memory_space<vmem>>, vector<1x12x342xf32>
    %21 = vector.shape_cast %20 : vector<1x12x342xf32> to vector<12x342xf32>
    %22 = vector.extract_strided_slice %21 {offsets = [0, 0], sizes = [12, 288], strides = [1, 1]} : vector<12x342xf32> to vector<12x288xf32>
    %c0_14 = arith.constant 0 : index
    %c288 = arith.constant 288 : index
    %23 = vector.load %arg9[%c0_14, %c288] : memref<109x576xf32, #tpu.memory_space<vmem>>, vector<12x288xf32>
    tpu.vector_store %arg9[%c0_14, %c288], %22 {strides = array<i32>} : memref<109x576xf32, #tpu.memory_space<vmem>>, vector<12x288xf32>,
    %24 = vector.extract_strided_slice %21 {offsets = [0, 1], sizes = [12, 288], strides = [1, 1]} : vector<12x342xf32> to vector<12x288xf32>
    %c12_15 = arith.constant 12 : index
    %c288_16 = arith.constant 288 : index
    %25 = vector.load %arg9[%c12_15, %c288_16] : memref<109x576xf32, #tpu.memory_space<vmem>>, vector<12x288xf32>
    tpu.vector_store %arg9[%c12_15, %c288_16], %24 {strides = array<i32>} : memref<109x576xf32, #tpu.memory_space<vmem>>, vector<12x288xf32>,
    %26 = vector.extract_strided_slice %21 {offsets = [0, 2], sizes = [12, 288], strides = [1, 1]} : vector<12x342xf32> to vector<12x288xf32>
    %c24_17 = arith.constant 24 : index
    %c288_18 = arith.constant 288 : index
    %27 = vector.load %arg9[%c24_17, %c288_18] : memref<109x576xf32, #tpu.memory_space<vmem>>, vector<12x288xf32>
    tpu.vector_store %arg9[%c24_17, %c288_18], %26 {strides = array<i32>} : memref<109x576xf32, #tpu.memory_space<vmem>>, vector<12x288xf32>,
    %28 = vector.extract_strided_slice %21 {offsets = [0, 18], sizes = [12, 288], strides = [1, 1]} : vector<12x342xf32> to vector<12x288xf32>
    %c36_19 = arith.constant 36 : index
    %c288_20 = arith.constant 288 : index
    %29 = vector.load %arg9[%c36_19, %c288_20] : memref<109x576xf32, #tpu.memory_space<vmem>>, vector<12x288xf32>
    tpu.vector_store %arg9[%c36_19, %c288_20], %28 {strides = array<i32>} : memref<109x576xf32, #tpu.memory_space<vmem>>, vector<12x288xf32>,
    %30 = vector.extract_strided_slice %21 {offsets = [0, 19], sizes = [12, 288], strides = [1, 1]} : vector<12x342xf32> to vector<12x288xf32>
    %c48_21 = arith.constant 48 : index
    %c288_22 = arith.constant 288 : index
    %31 = vector.load %arg9[%c48_21, %c288_22] : memref<109x576xf32, #tpu.memory_space<vmem>>, vector<12x288xf32>
    tpu.vector_store %arg9[%c48_21, %c288_22], %30 {strides = array<i32>} : memref<109x576xf32, #tpu.memory_space<vmem>>, vector<12x288xf32>,
    %32 = vector.extract_strided_slice %21 {offsets = [0, 20], sizes = [12, 288], strides = [1, 1]} : vector<12x342xf32> to vector<12x288xf32>
    %c60_23 = arith.constant 60 : index
    %c288_24 = arith.constant 288 : index
    %33 = vector.load %arg9[%c60_23, %c288_24] : memref<109x576xf32, #tpu.memory_space<vmem>>, vector<12x288xf32>
    tpu.vector_store %arg9[%c60_23, %c288_24], %32 {strides = array<i32>} : memref<109x576xf32, #tpu.memory_space<vmem>>, vector<12x288xf32>,
    %34 = vector.extract_strided_slice %21 {offsets = [0, 36], sizes = [12, 288], strides = [1, 1]} : vector<12x342xf32> to vector<12x288xf32>
    %c72_25 = arith.constant 72 : index
    %c288_26 = arith.constant 288 : index
    %35 = vector.load %arg9[%c72_25, %c288_26] : memref<109x576xf32, #tpu.memory_space<vmem>>, vector<12x288xf32>
    tpu.vector_store %arg9[%c72_25, %c288_26], %34 {strides = array<i32>} : memref<109x576xf32, #tpu.memory_space<vmem>>, vector<12x288xf32>,
    %36 = vector.extract_strided_slice %21 {offsets = [0, 37], sizes = [12, 288], strides = [1, 1]} : vector<12x342xf32> to vector<12x288xf32>
    %c84_27 = arith.constant 84 : index
    %c288_28 = arith.constant 288 : index
    %37 = vector.load %arg9[%c84_27, %c288_28] : memref<109x576xf32, #tpu.memory_space<vmem>>, vector<12x288xf32>
    tpu.vector_store %arg9[%c84_27, %c288_28], %36 {strides = array<i32>} : memref<109x576xf32, #tpu.memory_space<vmem>>, vector<12x288xf32>,
    %38 = vector.extract_strided_slice %21 {offsets = [0, 38], sizes = [12, 288], strides = [1, 1]} : vector<12x342xf32> to vector<12x288xf32>
    %c96_29 = arith.constant 96 : index
    %c288_30 = arith.constant 288 : index
    %39 = vector.load %arg9[%c96_29, %c288_30] : memref<109x576xf32, #tpu.memory_space<vmem>>, vector<12x288xf32>
    tpu.vector_store %arg9[%c96_29, %c288_30], %38 {strides = array<i32>} : memref<109x576xf32, #tpu.memory_space<vmem>>, vector<12x288xf32>,
    %cst = arith.constant 1.000000e+00 : f32
    %40 = vector.broadcast %cst : f32 to vector<1x576xf32>
    %c108 = arith.constant 108 : index
    %c0_31 = arith.constant 0 : index
    %41 = vector.load %arg9[%c108, %c0_31] : memref<109x576xf32, #tpu.memory_space<vmem>>, vector<1x576xf32>
    tpu.vector_store %arg9[%c108, %c0_31], %40 {strides = array<i32>} : memref<109x576xf32, #tpu.memory_space<vmem>>, vector<1x576xf32>,
    %c0_32 = arith.constant 0 : index
    %c0_33 = arith.constant 0 : index
    %42 = vector.load %arg2[%c0_32, %c0_33] : memref<32x109xf32, #tpu.memory_space<vmem>>, vector<32x109xf32>
    %c0_34 = arith.constant 0 : index
    %c0_35 = arith.constant 0 : index
    %43 = vector.load %arg9[%c0_34, %c0_35] : memref<109x576xf32, #tpu.memory_space<vmem>>, vector<109x576xf32>
    %cst_36 = arith.constant dense<0.000000e+00> : vector<32x576xf32>
    %44 = tpu.matmul %42, %43, %cst_36 {dimension_numbers = #tpu.dot_dimension_numbers<[1], [0], [0], [1], [0, 0, 1, 1], [], []>} : vector<32x109xf32>, vector<109x576xf32>, vector<32x576xf32> -> vector<32x576xf32>
    %45 = vector.extract_strided_slice %44 {offsets = [0, 0], sizes = [8, 576], strides = [1, 1]} : vector<32x576xf32> to vector<8x576xf32>
    %46 = vector.extract_strided_slice %44 {offsets = [8, 0], sizes = [8, 576], strides = [1, 1]} : vector<32x576xf32> to vector<8x576xf32>
    %47 = vector.extract_strided_slice %44 {offsets = [16, 0], sizes = [8, 576], strides = [1, 1]} : vector<32x576xf32> to vector<8x576xf32>
    %48 = vector.extract_strided_slice %44 {offsets = [24, 0], sizes = [8, 576], strides = [1, 1]} : vector<32x576xf32> to vector<8x576xf32>
    %c0_37 = arith.constant 0 : index
    %c0_38 = arith.constant 0 : index
    %49 = vector.load %arg3[%c0_37, %c0_38] : memref<8x576xf32, #tpu.memory_space<vmem>>, vector<8x576xf32>
    %c0_39 = arith.constant 0 : index
    %c0_40 = arith.constant 0 : index
    %50 = vector.load %arg4[%c0_39, %c0_40] : memref<8x576xf32, #tpu.memory_space<vmem>>, vector<8x576xf32>
    %c0_41 = arith.constant 0 : index
    %c0_42 = arith.constant 0 : index
    %51 = vector.load %arg5[%c0_41, %c0_42] : memref<8x576xf32, #tpu.memory_space<vmem>>, vector<8x576xf32>
    %c0_43 = arith.constant 0 : index
    %c0_44 = arith.constant 0 : index
    %52 = vector.load %arg6[%c0_43, %c0_44] : memref<8x576xf32, #tpu.memory_space<vmem>>, vector<8x576xf32>
    %53 = arith.mulf %50, %49 : vector<8x576xf32>
    %54 = arith.addf %45, %53 : vector<8x576xf32>
    %55 = arith.negf %54 : vector<8x576xf32>
    %56 = math.exp %55 : vector<8x576xf32>
    %cst_45 = arith.constant 1.000000e+00 : f32
    %57 = vector.broadcast %cst_45 : f32 to vector<8x576xf32>
    %58 = arith.addf %57, %56 : vector<8x576xf32>
    %59 = arith.divf %57, %58 : vector<8x576xf32>
    %60 = arith.mulf %51, %49 : vector<8x576xf32>
    %61 = arith.addf %46, %60 : vector<8x576xf32>
    %62 = arith.negf %61 : vector<8x576xf32>
    %63 = math.exp %62 : vector<8x576xf32>
    %cst_46 = arith.constant 1.000000e+00 : f32
    %64 = vector.broadcast %cst_46 : f32 to vector<8x576xf32>
    %65 = arith.addf %64, %63 : vector<8x576xf32>
    %66 = arith.divf %64, %65 : vector<8x576xf32>
    %67 = arith.mulf %66, %49 : vector<8x576xf32>
    %68 = math.tanh %47 : vector<8x576xf32>
    %69 = arith.mulf %59, %68 : vector<8x576xf32>
    %70 = arith.addf %67, %69 : vector<8x576xf32>
    %71 = arith.mulf %52, %70 : vector<8x576xf32>
    %72 = arith.addf %48, %71 : vector<8x576xf32>
    %73 = arith.negf %72 : vector<8x576xf32>
    %74 = math.exp %73 : vector<8x576xf32>
    %cst_47 = arith.constant 1.000000e+00 : f32
    %75 = vector.broadcast %cst_47 : f32 to vector<8x576xf32>
    %76 = arith.addf %75, %74 : vector<8x576xf32>
    %77 = arith.divf %75, %76 : vector<8x576xf32>
    %78 = math.tanh %70 : vector<8x576xf32>
    %79 = arith.mulf %77, %78 : vector<8x576xf32>
    %c0_48 = arith.constant 0 : index
    %c0_49 = arith.constant 0 : index
    %80 = vector.load %arg7[%c0_48, %c0_49] : memref<8x576xf32, #tpu.memory_space<vmem>>, vector<8x576xf32>
    tpu.vector_store %arg7[%c0_48, %c0_49], %79 {strides = array<i32>} : memref<8x576xf32, #tpu.memory_space<vmem>>, vector<8x576xf32>,
    %c0_50 = arith.constant 0 : index
    %c0_51 = arith.constant 0 : index
    %81 = vector.load %arg8[%c0_50, %c0_51] : memref<8x576xf32, #tpu.memory_space<vmem>>, vector<8x576xf32>
    tpu.vector_store %arg8[%c0_50, %c0_51], %70 {strides = array<i32>} : memref<8x576xf32, #tpu.memory_space<vmem>>, vector<8x576xf32>,
    return
  }
  func.func @transform_0(%arg0: i32) -> (i32, i32, i32) {
    %c0_i32 = arith.constant 0 : i32
    %c0_i32_0 = arith.constant 0 : i32
    %c0_i32_1 = arith.constant 0 : i32
    %c0_i32_2 = arith.constant 0 : i32
    return %c0_i32, %c0_i32_0, %c0_i32_1 : i32, i32, i32
  }
  func.func @transform_1(%arg0: i32) -> (i32, i32) {
    %c0_i32 = arith.constant 0 : i32
    %c0_i32_0 = arith.constant 0 : i32
    %c0_i32_1 = arith.constant 0 : i32
    return %c0_i32, %c0_i32_0 : i32, i32
  }
  func.func @transform_2(%arg0: i32) -> (i32, i32) {
    %c0_i32 = arith.constant 0 : i32
    %c0_i32_0 = arith.constant 0 : i32
    %c0_i32_1 = arith.constant 0 : i32
    return %c0_i32, %c0_i32_0 : i32, i32
  }
  func.func @transform_3(%arg0: i32) -> (i32, i32) {
    %c0_i32 = arith.constant 0 : i32
    %c0_i32_0 = arith.constant 0 : i32
    %c0_i32_1 = arith.constant 0 : i32
    return %c0_i32, %c0_i32_0 : i32, i32
  }
  func.func @transform_4(%arg0: i32) -> (i32, i32) {
    %c0_i32 = arith.constant 0 : i32
    %c0_i32_0 = arith.constant 0 : i32
    %c0_i32_1 = arith.constant 0 : i32
    return %c0_i32, %c0_i32_0 : i32, i32
  }
  func.func @transform_5(%arg0: i32) -> (i32, i32) {
    %c0_i32 = arith.constant 0 : i32
    %c0_i32_0 = arith.constant 0 : i32
    %c0_i32_1 = arith.constant 0 : i32
    return %c0_i32, %c0_i32_0 : i32, i32
  }
  func.func @transform_6(%arg0: i32) -> (i32, i32) {
    %c0_i32 = arith.constant 0 : i32
    %c0_i32_0 = arith.constant 0 : i32
    %c0_i32_1 = arith.constant 0 : i32
    return %c0_i32, %c0_i32_0 : i32, i32
  }
  func.func @transform_7(%arg0: i32) -> (i32, i32) {
    %c0_i32 = arith.constant 0 : i32
    %c0_i32_0 = arith.constant 0 : i32
    %c0_i32_1 = arith.constant 0 : i32
    return %c0_i32, %c0_i32_0 : i32, i32
  }
}

</mosaic_0001>

<bundles_post_ra>
// kernel: tpu_custom_call.1
= control target key start
LH: loop header
LB: loop body
LE: loop exit
PB: predicated region body
PF: predicated region fallthrough
CT: control target
= control target key end

     0   :  { %13 = vsyncpa [#allocation4], 0  ;;  %s2222_s0 = inlined_call_operand.vmem [shape: f32[2,12,342], index: 0, kind: input, shape index: {}]   ;;  %s2223_s1 = inlined_call_operand.hbm [shape: f32[32,109], index: 1, kind: input, shape index: {}]   ;;  %s2224_s2 = inlined_call_operand.vmem [shape: f32[8,576], index: 2, kind: input, shape index: {}]   ;;  %s2225_s3 = inlined_call_operand.vmem [shape: f32[8,576], index: 3, kind: input, shape index: {}]   ;;  %s2226_s4 = inlined_call_operand.vmem [shape: f32[8,576], index: 4, kind: input, shape index: {}]   ;;  %s2227_s5 = inlined_call_operand.vmem [shape: f32[8,576], index: 5, kind: input, shape index: {}]   ;;  %s2228_s6 = inlined_call_operand.hbm [shape: f32[8,576], index: 6, kind: output, shape index: {0}]   ;;  %s2229_s7 = inlined_call_operand.hbm [shape: f32[8,576], index: 7, kind: output, shape index: {1}]  }
   0x1   :  { %14 = vsyncpa [#allocation5], 0 }
   0x2   :  { %15 = vsyncpa [#allocation8], 0  ;;  %s1544_s24 = smov [#allocation3]   ;;  %s1472_s28 = scalar_lea.hbm %s2223_s1, 512 }
   0x3   :  { %s23_s25 = sshll.u32 %s1544_s24, 4  ;;  %p1473_p0 = scmp.ne.s32.totalorder %s2223_s1, %s1472_s28  ;;  %s24_s25 = int_to_ptr.vmem [resolvable:$true] %s23_s25 }
   0x4   :  { %p1476_p1 = scmp.lt.u32.totalorder %s1472_s28, %s2223_s1 }
   0x6   :  { %p1478_p2 = pnand %p1476_p1, %p1473_p0 }
   0x8   :  { %1481 = shalt.err (!%p1478_p2)
}
   0x9   :  { %s1482_s10 = scalar_lea.vmem %s24_s25, 512  ;;  %p1487_p4 = scmp.lt.s32.totalorder %s24_s25, %s24_s25 }
   0xa   :  { %p1483_p3 = scmp.ne.s32.totalorder %s24_s25, %s1482_s10  ;;  %p1488_p5 = scmp.lt.s32.totalorder %s1482_s10, %s1482_s10 }
   0xc   :  { %p1489_p6 = por %p1488_p5, %p1487_p4 }
   0xe   :  { %p1490_p7 = pnand %p1489_p6, %p1483_p3 }
  0x10   :  { %1493 = shalt.err (!%p1490_p7)
}
  0x11   :  { %s1545_s11 = smov 128   ;;  %s1546_s12 = smov 8  }
  0x12   :  { %29 = dma.hbm_to_vmem [thread:$0]  %s2223_s1, 512, %s24_s25, [#allocation4], %s1545_s11, %s1545_s11, %s1546_s12  }
  0x13   :  { %1538 = dma.done.wait [#allocation4], 512  }
  0x14   :  { %1539 = vsyncadd [#allocation4], 4294966784  ;;  %v1624_v0 = vld [vmem:[%s2222_s0 + $0x8] sm:$0xff]  ;;  %v1629_v1 = vld [vmem:[%s2222_s0] sm:$0xff]  ;;  %vm49_vm0 = vcmask 261120   ;;  %s1547_s21 = smov 126   ;;  %v592_v25 = vlaneseq }
  0x15   :  { %v1634_v2 = vld [vmem:[%s2222_s0 + $0x10] sm:$0xff]  ;;  %103 = vrot.lane.b32.xlu1 %v1624_v0, %s1547_s21  ;;  %v1639_v3 = vrot.slane %v1624_v0, 4  ;;  %v1642_v4 = vrot.slane %v1629_v1, 4  ;;  %v1647_v5 = vld [vmem:[%s2222_s0 + $0x20] sm:$0xf]  ;;  %s1548_s27 = smov 127  }
  0x16   :  { %50 = vst.msk [vmem:[#allocation2 + $0x10] sm:$0xff] %vm49_vm0, %v1634_v2  ;;  %52 = vst [vmem:[#allocation2 + $0x30] sm:$0xf] %v1647_v5  ;;  %v67_v6 = vrot.slane %v1647_v5, 4  ;;  %v1656_v7 = vld [vmem:[%s2222_s0 + $0x28] sm:$0xf] }
  0x17   :  { %v1661_v8 = vld [vmem:[%s2222_s0 + $0x18] sm:$0xf]  ;;  %73 = vrot.lane.b32.xlu0 %v1639_v3, %s1548_s27  ;;  %v1665_v9 = vrot.slane %v1634_v2, 4  ;;  %vm61_vm1 = vcmask 1043456   ;;  %v69_v10 = vrot.slane %v1656_v7, 4  ;;  %vm53_vm2 = vcmask 257024  }
  0x18   :  { %51 = vst [vmem:[#allocation2 + $0x28] sm:$0xf] %v1661_v8  ;;  %v68_v11 = vsel %vm61_vm1, %v1639_v3, %v67_v6  ;;  %v65_v12 = vrot.slane %v1661_v8, 4  ;;  %54 = vst.msk [vmem:[#allocation2 + $0x38] sm:$0xf] %vm53_vm2, %v1656_v7  ;;  %s1549_s28 = smov 110  }
  0x19   :  { %71 = vrot.lane.b32.xlu1 %v1642_v4, %s1548_s27  ;;  %v70_v13 = vsel %vm61_vm1, %v1665_v9, %v69_v10  ;;  %s1550_s29 = smov 109   ;;  %s1551_s30 = smov 108   ;;  %v1706_v15 = vld [vmem:[%s2222_s0 + $0x30] sm:$0xff]  ;;  %v1714_v16 = vld [vmem:[%s2222_s0 + $0x48] sm:$0xf]  ;;  %v1720_v17 = vld [vmem:[%s2222_s0 + $0x38] sm:$0xff] }
  0x1a   :  { %v66_v14 = vsel %vm61_vm1, %v1642_v4, %v65_v12  ;;  %s1552_s8 = smov 92   ;;  %s1553_s11 = smov 32   ;;  %v1725_v18 = vrot.slane %v1706_v15, 4  ;;  %v1732_v19 = vld [vmem:[%s2222_s0 + $0x50] sm:$0xf]  ;;  %v1739_v20 = vrot.slane %v1720_v17, 4 }
  0x1b   :  { %75 = vrot.lane.b32.xlu0 %v1665_v9, %s1548_s27  ;;  %s1554_s18 = smov 31   ;;  %s1555_s19 = smov 91   ;;  %v354_v21 = vrot.slane %v1732_v19, 4  ;;  %v352_v22 = vrot.slane %v1714_v16, 4  ;;  %vm594_vm3 = vcmp.lt.s32.totalorder %v592_v25, 576  ;;  %v1556_v26 = vmov 1.0  }
  0x1c   :  { %597 = vst.msk [vmem:[#allocation2 + $0x20c] ss:$8 sm:$0xf] %vm594_vm3, %v1556_v26  ;;  %598 = vst.msk [vmem:[#allocation2 + $0x20c] ss:$8 sm:$0x10] %vm594_vm3, %v1556_v26 }
  0x1d   :  { %79 = vrot.lane.b32.xlu1 %v68_v11, %s1548_s27  ;;  %v1752_v23 = vsel %vm61_vm1, %v1739_v20, %v354_v21  ;;  %v1757_v24 = vsel %vm61_vm1, %v1725_v18, %v352_v22  ;;  %s1557_s20 = smov 30   ;;  %vm83_vm4 = vcmask 1039360   ;;  %vm96_vm5 = vcmask 261124   ;;  %s1559_s1 = smov 14   ;;  %v1791_v36 = vld [vmem:[%s2222_s0 + $0x58] sm:$0xf] }
  0x1e   :  { %vm113_vm6 = vcmask 1031168   ;;  %v1799_v39 = vld [vmem:[%s2222_s0 + $0x40] sm:$0xff]  ;;  %s1560_s0 = smov 13   ;;  %v1561_v51 = vmov 0.0   ;;  %v356_v56 = vrot.slane %v1791_v36, 4  ;;  %vm142_vm7 = vcmask 900096  }
  0x1f   :  { %81 = vrot.lane.b32.xlu0 %v70_v13, %s1548_s27  ;;  %v1809_v46 = vrot.slane %v1799_v39, 4  ;;  %765 = vmatprep.mubr.f32.mxu0 %v1561_v51  ;;  %s1562_s26 = smov 12   ;;  %vm171_vm8 = vcmask 891904   ;;  %vm200_vm9 = vcmask 883712   ;;  %vm229_vm10 = vcmask 752640   ;;  %s1567_s17 = smov [#allocation7]  }
  0x20   :  { %854 = vmatprep.mubr.f32.mxu1 %v1561_v51  ;;  %vm339_vm11 = vcmask 1047808   ;;  %vm344_vm12 = vcmask 1043712   ;;  %vm381_vm13 = vcmask 1047812   ;;  %vm370_vm14 = vcmask 252928  }
  0x21   :  { %77 = vrot.lane.b32.xlu1 %v66_v14, %s1548_s27  ;;  %v1832_v60 = vsel %vm61_vm1, %v1809_v46, %v356_v56  ;;  %s1563_s27 = smov 124   ;;  %vm258_vm15 = vcmask 744448   ;;  %vm401_vm1 = vcmask 244736   ;;  %vm287_vm3 = vcmask 736256  }
  0x23   :  { %105 = vrot.lane.b32.xlu0 %v1634_v2, %s1547_s21 }
  0x25   :  { %109 = vrot.lane.b32.xlu1 %v1647_v5, %s1547_s21 }
  0x27   :  { %101 = vrot.lane.b32.xlu0 %v1629_v1, %s1547_s21 }
  0x29   :  { %132 = vrot.lane.b32.xlu1 %v1639_v3, %s1549_s28 }
  0x2b   :  { %111 = vrot.lane.b32.xlu0 %v1656_v7, %s1547_s21 }
  0x2d   :  { %138 = vrot.lane.b32.xlu1 %v68_v11, %s1549_s28 }
  0x2f   :  { %134 = vrot.lane.b32.xlu0 %v1665_v9, %s1549_s28 }
  0x31   :  { %107 = vrot.lane.b32.xlu1 %v1661_v8, %s1547_s21  ;;  %s1558_s21 = smov 90  }
  0x33   :  { %140 = vrot.lane.b32.xlu0 %v70_v13, %s1549_s28 }
  0x35   :  { %136 = vrot.lane.b32.xlu1 %v66_v14, %s1549_s28 }
  0x37   :  { %130 = vrot.lane.b32.xlu0 %v1642_v4, %s1549_s28  ;;  %s1564_s28 = smov 123  }
  0x39   :  { %163 = vrot.lane.b32.xlu1 %v1634_v2, %s1550_s29 }
  0x3b   :  { %161 = vrot.lane.b32.xlu0 %v1624_v0, %s1550_s29 }
  0x3d   :  { %169 = vrot.lane.b32.xlu1 %v1656_v7, %s1550_s29 }
  0x3f   :  { %167 = vrot.lane.b32.xlu0 %v1647_v5, %s1550_s29 }
  0x41   :  { %192 = vrot.lane.b32.xlu1 %v1665_v9, %s1551_s30 }
  0x43   :  { %190 = vrot.lane.b32.xlu0 %v1639_v3, %s1551_s30 }
  0x45   :  { %165 = vrot.lane.b32.xlu1 %v1661_v8, %s1550_s29 }
  0x47   :  { %159 = vrot.lane.b32.xlu0 %v1629_v1, %s1550_s29  ;;  %s1565_s29 = smov 122  }
  0x49   :  { %196 = vrot.lane.b32.xlu1 %v68_v11, %s1551_s30 }
  0x4b   :  { %188 = vrot.lane.b32.xlu0 %v1642_v4, %s1551_s30 }
  0x4d   :  { %219 = vrot.lane.b32.xlu1 %v1624_v0, %s1552_s8 }
  0x4f   :  { %198 = vrot.lane.b32.xlu0 %v70_v13, %s1551_s30 }
  0x51   :  { %194 = vrot.lane.b32.xlu1 %v66_v14, %s1551_s30 }
  0x53   :  { %221 = vrot.lane.b32.xlu0 %v1634_v2, %s1552_s8 }
  0x55   :  { %317 = vrot.lane.b32.xlu1 %v1706_v15, %s1553_s11 }
  0x57   :  { %217 = vrot.lane.b32.xlu0 %v1629_v1, %s1552_s8 }
  0x59   :  { %323 = vrot.lane.b32.xlu1 %v1714_v16, %s1553_s11 }
  0x5b   :  { %319 = vrot.lane.b32.xlu0 %v1720_v17, %s1553_s11 }
  0x5d   :  { %358 = vrot.lane.b32.xlu1 %v1725_v18, %s1554_s18 }
  0x5f   :  { %325 = vrot.lane.b32.xlu0 %v1732_v19, %s1553_s11 }
  0x61   :  { %225 = vrot.lane.b32.xlu1 %v1647_v5, %s1552_s8 }
  0x63   :  { %360 = vrot.lane.b32.xlu0 %v1739_v20, %s1554_s18 }
  0x65   :  { %248 = vrot.lane.b32.xlu1 %v1639_v3, %s1555_s19 }
  0x67   :  { %227 = vrot.lane.b32.xlu0 %v1656_v7, %s1552_s8 }
  0x69   :  { %254 = vrot.lane.b32.xlu1 %v68_v11, %s1555_s19 }
  0x6b   :  { %250 = vrot.lane.b32.xlu0 %v1665_v9, %s1555_s19 }
  0x6d   :  { %223 = vrot.lane.b32.xlu1 %v1661_v8, %s1552_s8 }
  0x6f   :  { %256 = vrot.lane.b32.xlu0 %v70_v13, %s1555_s19 }
  0x71   :  { %252 = vrot.lane.b32.xlu1 %v66_v14, %s1555_s19 }
  0x73   :  { %246 = vrot.lane.b32.xlu0 %v1642_v4, %s1555_s19 }
  0x75   :  { %366 = vrot.lane.b32.xlu1 %v1752_v23, %s1554_s18 }
  0x77   :  { %364 = vrot.lane.b32.xlu0 %v1757_v24, %s1554_s18 }
  0x79   :  { %391 = vrot.lane.b32.xlu1 %v1720_v17, %s1557_s20 }
  0x7b   :  { %389 = vrot.lane.b32.xlu0 %v1706_v15, %s1557_s20 }
  0x7d   :  { %279 = vrot.lane.b32.xlu1 %v1634_v2, %s1558_s21 }
  0x7f   :  { %277 = vrot.lane.b32.xlu0 %v1624_v0, %s1558_s21 }
  0x81   :  { %285 = vrot.lane.b32.xlu1 %v1656_v7, %s1558_s21 }
  0x83   :  { %283 = vrot.lane.b32.xlu0 %v1647_v5, %s1558_s21 }
  0x85   :  { %281 = vrot.lane.b32.xlu1 %v1661_v8, %s1558_s21 }
  0x87   :  { %v104_v27 = vpop.permute.xlu1 %103  ;;  %275 = vrot.lane.b32.xlu0 %v1629_v1, %s1558_s21 }
  0x89   :  { %v74_v28 = vpop.permute.xlu0 %73  ;;  %397 = vrot.lane.b32.xlu1 %v1732_v19, %s1557_s20 }
  0x8b   :  { %395 = vrot.lane.b32.xlu0 %v1714_v16, %s1557_s20  ;;  %v72_v29 = vpop.permute.xlu1 %71 }
  0x8c   :  { %v84_v30 = vsel %vm83_vm4, %v72_v29, %v74_v28 }
  0x8d   :  { %94 = vst [vmem:[#allocation2 + $0x28] sm:$0xf0] %v84_v30  ;;  %v76_v31 = vpop.permute.xlu0 %75  ;;  %420 = vrot.lane.b32.xlu1 %v1739_v20, %s1559_s1 }
  0x8e   :  { %v85_v32 = vsel %vm83_vm4, %v74_v28, %v76_v31  ;;  %97 = vst.msk [vmem:[#allocation2 + $0x38] sm:$0xf0] %vm96_vm5, %v76_v31 }
  0x8f   :  { %95 = vst [vmem:[#allocation2 + $0x30] sm:$0xf0] %v85_v32  ;;  %418 = vrot.lane.b32.xlu0 %v1725_v18, %s1559_s1  ;;  %v80_v33 = vpop.permute.xlu1 %79 }
  0x91   :  { %v82_v34 = vpop.permute.xlu0 %81  ;;  %426 = vrot.lane.b32.xlu1 %v1752_v23, %s1559_s1 }
  0x92   :  { %v87_v35 = vsel %vm83_vm4, %v80_v33, %v82_v34  ;;  %100 = vst.msk [vmem:[#allocation2 + $0x60] sm:$0xff] %vm49_vm0, %v82_v34 }
  0x93   :  { %424 = vrot.lane.b32.xlu0 %v1757_v24, %s1559_s1  ;;  %v78_v37 = vpop.permute.xlu1 %77 }
  0x94   :  { %v86_v38 = vsel %vm83_vm4, %v78_v37, %v80_v33  ;;  %v608_v41 = vld [vmem:[#allocation2 + $0x28] sm:$0xff]  ;;  %vm685_vm4 = vcmask 1044480  }
  0x95   :  { %v106_v40 = vpop.permute.xlu0 %105  ;;  %327 = vrot.lane.b32.xlu1 %v1791_v36, %s1553_s11  ;;  %v1265_v47 = vpack.c.bf16 %v608_v41, %v1629_v1 }
  0x96   :  { %v115_v42 = vsel %vm113_vm6, %v104_v27, %v106_v40  ;;  %126 = vst.msk [vmem:[#allocation2 + $0x88] sm:$0xff] %vm49_vm0, %v106_v40  ;;  %v609_v43 = vld [vmem:[#allocation2 + $0x30] sm:$0xff] }
  0x97   :  { %321 = vrot.lane.b32.xlu0 %v1799_v39, %s1553_s11  ;;  %v110_v44 = vpop.permute.xlu1 %109  ;;  %v1263_v45 = vpack.c.bf16 %v609_v43, %v1624_v0  ;;  %v1267_v49 = vpack.c.bf16 %v115_v42, %v87_v35 }
  0x99   :  { %1264 = vmatprep.subr.bf16.mxu0 %v1263_v45  ;;  %v102_v48 = vpop.permute.xlu0 %101  ;;  %447 = vrot.lane.b32.xlu1 %v1706_v15, %s1560_s0 }
  0x9a   :  { %v114_v50 = vsel %vm113_vm6, %v102_v48, %v104_v27  ;;  %1266 = vmatpush1.bf16.msra.mxu0 %v1265_v47 }
  0x9b   :  { %362 = vrot.lane.b32.xlu0 %v1809_v46, %s1554_s18  ;;  %v133_v52 = vpop.permute.xlu1 %132  ;;  %1268 = vmatprep.subr.bf16.mxu0 %v1267_v49  ;;  %v1269_v53 = vpack.c.bf16 %v114_v50, %v86_v38 }
  0x9d   :  { %v112_v54 = vpop.permute.xlu0 %111  ;;  %453 = vrot.lane.b32.xlu1 %v1714_v16, %s1560_s0 }
  0x9e   :  { %v117_v55 = vsel %vm113_vm6, %v110_v44, %v112_v54  ;;  %129 = vst.msk [vmem:[#allocation2 + $0xb0] sm:$0xf] %vm53_vm2, %v112_v54  ;;  %1270 = vmatpush1.bf16.msra.mxu0 %v1269_v53 }
  0x9f   :  { %128 = vst [vmem:[#allocation2 + $0xa8] sm:$0xf] %v117_v55  ;;  %449 = vrot.lane.b32.xlu0 %v1720_v17, %s1560_s0  ;;  %v139_v57 = vpop.permute.xlu1 %138 }
  0xa1   :  { %v135_v58 = vpop.permute.xlu0 %134  ;;  %476 = vrot.lane.b32.xlu1 %v1725_v18, %s1562_s26 }
  0xa2   :  { %v144_v59 = vsel %vm142_vm7, %v133_v52, %v135_v58  ;;  %155 = vst.msk [vmem:[#allocation2 + $0xb0] sm:$0xf0] %vm96_vm5, %v135_v58 }
  0xa3   :  { %154 = vst [vmem:[#allocation2 + $0xa8] sm:$0xf0] %v144_v59  ;;  %455 = vrot.lane.b32.xlu0 %v1732_v19, %s1560_s0  ;;  %v108_v61 = vpop.permute.xlu1 %107 }
  0xa4   :  { %v116_v62 = vsel %vm113_vm6, %v108_v61, %v110_v44  ;;  %vm430_vm6 = vcmask 113664  }
  0xa5   :  { %127 = vst [vmem:[#allocation2 + $0xa0] sm:$0xf] %v116_v62  ;;  %v141_v63 = vpop.permute.xlu0 %140  ;;  %368 = vrot.lane.b32.xlu1 %v1832_v60, %s1554_s18  ;;  %s1160_s18 = sshll.u32 %s1567_s17, 4  ;;  %s1161_s18 = int_to_ptr.vmem [resolvable:$true] %s1160_s18 }
  0xa6   :  { %v146_v0 = vsel %vm142_vm7, %v139_v57, %v141_v63  ;;  %158 = vst.msk [vmem:[#allocation2 + $0xd8] sm:$0xff] %vm49_vm0, %v141_v63  ;;  %s1494_s21 = scalar_lea.vmem %s1161_s18, 640  ;;  %p1499_p9 = scmp.lt.s32.totalorder %s1161_s18, %s1161_s18 }
  0xa7   :  { %478 = vrot.lane.b32.xlu0 %v1739_v20, %s1562_s26  ;;  %v137_v1 = vpop.permute.xlu1 %136  ;;  %p1495_p8 = scmp.ne.s32.totalorder %s1161_s18, %s1494_s21  ;;  %p1500_p10 = scmp.lt.s32.totalorder %s1494_s21, %s1494_s21 }
  0xa8   :  { %v145_v2 = vsel %vm142_vm7, %v137_v1, %v139_v57 }
  0xa9   :  { %v131_v3 = vpop.permute.xlu0 %130  ;;  %482 = vrot.lane.b32.xlu1 %v1757_v24, %s1562_s26  ;;  %p1501_p11 = por %p1500_p10, %p1499_p9 }
  0xaa   :  { %v143_v4 = vsel %vm142_vm7, %v131_v3, %v133_v52  ;;  %v624_v5 = vld [vmem:[#allocation2 + $0xa8] sm:$0xff]  ;;  %vm347_vm7 = vcmask 519168  }
  0xab   :  { %153 = vst [vmem:[#allocation2 + $0xa0] sm:$0xf0] %v143_v4  ;;  %393 = vrot.lane.b32.xlu0 %v1799_v39, %s1557_s20  ;;  %v164_v6 = vpop.permute.xlu1 %163  ;;  %v1271_v7 = vpack.c.bf16 %v146_v0, %v624_v5  ;;  %p1502_p12 = pnand %p1501_p11, %p1495_p8 }
  0xac   :  { %184 = vst.msk [vmem:[#allocation2 + $0x100] sm:$0xff] %vm49_vm0, %v164_v6 }
  0xad   :  { %v162_v8 = vpop.permute.xlu0 %161  ;;  %507 = vrot.lane.b32.xlu1 %v1720_v17, %s1563_s27  ;;  %1272 = vmatprep.subr.bf16.mxu0 %v1271_v7 }
  0xae   :  { %v173_v9 = vsel %vm171_vm8, %v162_v8, %v164_v6 }
  0xaf   :  { %484 = vrot.lane.b32.xlu0 %v1752_v23, %s1562_s26  ;;  %v170_v10 = vpop.permute.xlu1 %169 }
  0xb0   :  { %187 = vst.msk [vmem:[#allocation2 + $0x128] sm:$0xf] %vm53_vm2, %v170_v10 }
  0xb1   :  { %v168_v11 = vpop.permute.xlu0 %167  ;;  %505 = vrot.lane.b32.xlu1 %v1706_v15, %s1563_s27 }
  0xb2   :  { %v175_v12 = vsel %vm171_vm8, %v168_v11, %v170_v10  ;;  %v623_v13 = vld [vmem:[#allocation2 + $0xa0] sm:$0xff] }
  0xb3   :  { %186 = vst [vmem:[#allocation2 + $0x120] sm:$0xf] %v175_v12  ;;  %509 = vrot.lane.b32.xlu0 %v1799_v39, %s1563_s27  ;;  %v193_v14 = vpop.permute.xlu1 %192  ;;  %v1273_v21 = vpack.c.bf16 %v145_v2, %v623_v13 }
  0xb4   :  { %213 = vst.msk [vmem:[#allocation2 + $0x128] sm:$0xf0] %vm96_vm5, %v193_v14 }
  0xb5   :  { %v191_v22 = vpop.permute.xlu0 %190  ;;  %422 = vrot.lane.b32.xlu1 %v1809_v46, %s1559_s1  ;;  %1274 = vmatpush1.bf16.msra.mxu0 %v1273_v21 }
  0xb6   :  { %v202_v25 = vsel %vm200_vm9, %v191_v22, %v193_v14 }
  0xb7   :  { %212 = vst [vmem:[#allocation2 + $0x120] sm:$0xf0] %v202_v25  ;;  %399 = vrot.lane.b32.xlu0 %v1791_v36, %s1557_s20  ;;  %v166_v26 = vpop.permute.xlu1 %165 }
  0xb8   :  { %v174_v27 = vsel %vm171_vm8, %v166_v26, %v168_v11 }
  0xb9   :  { %185 = vst [vmem:[#allocation2 + $0x118] sm:$0xf] %v174_v27  ;;  %v160_v28 = vpop.permute.xlu0 %159  ;;  %513 = vrot.lane.b32.xlu1 %v1732_v19, %s1563_s27 }
  0xba   :  { %v172_v29 = vsel %vm171_vm8, %v160_v28, %v162_v8 }
  0xbb   :  { %428 = vrot.lane.b32.xlu0 %v1832_v60, %s1559_s1  ;;  %v197_v30 = vpop.permute.xlu1 %196 }
  0xbd   :  { %v189_v31 = vpop.permute.xlu0 %188  ;;  %536 = vrot.lane.b32.xlu1 %v1739_v20, %s1564_s28 }
  0xbe   :  { %v201_v32 = vsel %vm200_vm9, %v189_v31, %v191_v22  ;;  %v639_v33 = vld [vmem:[#allocation2 + $0x120] sm:$0xff] }
  0xbf   :  { %211 = vst [vmem:[#allocation2 + $0x118] sm:$0xf0] %v201_v32  ;;  %515 = vrot.lane.b32.xlu0 %v1791_v36, %s1563_s27  ;;  %v220_v34 = vpop.permute.xlu1 %219  ;;  %v1275_v35 = vpack.c.bf16 %v639_v33, %v173_v9 }
  0xc1   :  { %v199_v37 = vpop.permute.xlu0 %198  ;;  %542 = vrot.lane.b32.xlu1 %v1752_v23, %s1564_s28  ;;  %1276 = vmatprep.subr.bf16.mxu0 %v1275_v35 }
  0xc2   :  { %v204_v38 = vsel %vm200_vm9, %v197_v30, %v199_v37  ;;  %216 = vst.msk [vmem:[#allocation2 + $0x150] sm:$0xff] %vm49_vm0, %v199_v37 }
  0xc3   :  { %538 = vrot.lane.b32.xlu0 %v1809_v46, %s1564_s28  ;;  %v195_v20 = vpop.permute.xlu1 %194 }
  0xc4   :  { %v203_v40 = vsel %vm200_vm9, %v195_v20, %v197_v30  ;;  %vm342_vm9 = vcmask 523264  }
  0xc5   :  { %v222_v41 = vpop.permute.xlu0 %221  ;;  %511 = vrot.lane.b32.xlu1 %v1714_v16, %s1563_s27 }
  0xc6   :  { %v231_v42 = vsel %vm229_vm10, %v220_v34, %v222_v41  ;;  %242 = vst.msk [vmem:[#allocation2 + $0x178] sm:$0xff] %vm49_vm0, %v222_v41  ;;  %v638_v23 = vld [vmem:[#allocation2 + $0x118] sm:$0xff] }
  0xc7   :  { %544 = vrot.lane.b32.xlu0 %v1832_v60, %s1564_s28  ;;  %v318_v43 = vpop.permute.xlu1 %317  ;;  %v1277_v44 = vpack.c.bf16 %v638_v23, %v172_v29  ;;  %v1279_v45 = vpack.c.bf16 %v231_v42, %v204_v38  ;;  %v970_v23 = vld [vmem:[%s2225_s3 + $0x8] sm:$0xff] }
  0xc8   :  { %340 = vst.msk [vmem:[#allocation2 + $0x10] sm:$0xff] %vm339_vm11, %v318_v43 }
  0xc9   :  { %v218_v47 = vpop.permute.xlu0 %217  ;;  %540 = vrot.lane.b32.xlu1 %v1757_v24, %s1564_s28  ;;  %1278 = vmatpush1.bf16.msra.mxu0 %v1277_v44 }
  0xca   :  { %v230_v48 = vsel %vm229_vm10, %v218_v47, %v220_v34  ;;  %1280 = vmatprep.subr.bf16.mxu0 %v1279_v45 }
  0xcb   :  { %534 = vrot.lane.b32.xlu0 %v1725_v18, %s1564_s28  ;;  %v324_v49 = vpop.permute.xlu1 %323  ;;  %v1281_v50 = vpack.c.bf16 %v230_v48, %v203_v40 }
  0xcc   :  { %345 = vst.msk [vmem:[#allocation2 + $0x38] sm:$0xf] %vm344_vm12, %v324_v49 }
  0xcd   :  { %v1898_v52 = vpop.permute.xlu0 %319  ;;  %457 = vrot.lane.b32.xlu1 %v1791_v36, %s1560_s0  ;;  %1282 = vmatpush1.bf16.msra.mxu0 %v1281_v50 }
  0xce   :  { %v329_v24 = vsel %vm49_vm0, %v318_v43, %v1898_v52 }
  0xcf   :  { %451 = vrot.lane.b32.xlu0 %v1799_v39, %s1560_s0  ;;  %v359_v53 = vpop.permute.xlu1 %358  ;;  %v605_v0 = vld [vmem:[#allocation2 + $0x10] sm:$0xff] }
  0xd0   :  { %382 = vst.msk [vmem:[#allocation2 + $0x38] sm:$0xf0] %vm381_vm13, %v359_v53 }
  0xd1   :  { %v1907_v18 = vpop.permute.xlu0 %325  ;;  %565 = vrot.lane.b32.xlu1 %v1720_v17, %s1565_s29 }
  0xd2   :  { %v331_v54 = vsel %vm49_vm0, %v324_v49, %v1907_v18 }
  0xd3   :  { %346 = vst [vmem:[#allocation2 + $0x40] sm:$0xf] %v331_v54  ;;  %480 = vrot.lane.b32.xlu0 %v1809_v46, %s1562_s26  ;;  %v226_v55 = vpop.permute.xlu1 %225 }
  0xd5   :  { %v1914_v56 = vpop.permute.xlu0 %360  ;;  %571 = vrot.lane.b32.xlu1 %v1732_v19, %s1565_s29 }
  0xd6   :  { %v371_v57 = vsel %vm370_vm14, %v359_v53, %v1914_v56 }
  0xd7   :  { %383 = vst [vmem:[#allocation2 + $0x40] sm:$0xf0] %v371_v57  ;;  %567 = vrot.lane.b32.xlu0 %v1799_v39, %s1565_s29  ;;  %v249_v17 = vpop.permute.xlu1 %248  ;;  %v610_v61 = vld [vmem:[#allocation2 + $0x38] sm:$0xff] }
  0xd8   :  { %v1295_v1 = vpack.c.bf16 %v610_v61, %v605_v0  ;;  %v1978_v57 = vld [vmem:[#allocation3 + $0x8] sm:$0xff] }
  0xd9   :  { %v228_v58 = vpop.permute.xlu0 %227  ;;  %563 = vrot.lane.b32.xlu1 %v1706_v15, %s1565_s29 }
  0xda   :  { %v233_v59 = vsel %vm229_vm10, %v226_v55, %v228_v58  ;;  %245 = vst.msk [vmem:[#allocation2 + $0x1a0] sm:$0xf] %vm53_vm2, %v228_v58 }
  0xdb   :  { %244 = vst [vmem:[#allocation2 + $0x198] sm:$0xf] %v233_v59  ;;  %573 = vrot.lane.b32.xlu0 %v1791_v36, %s1565_s29  ;;  %v255_v46 = vpop.permute.xlu1 %254 }
  0xdd   :  { %v251_v19 = vpop.permute.xlu0 %250  ;;  %486 = vrot.lane.b32.xlu1 %v1832_v60, %s1562_s26 }
  0xde   :  { %v260_v39 = vsel %vm258_vm15, %v249_v17, %v251_v19  ;;  %271 = vst.msk [vmem:[#allocation2 + $0x1a0] sm:$0xf0] %vm96_vm5, %v251_v19  ;;  %v611_v62 = vld [vmem:[#allocation2 + $0x40] sm:$0xff] }
  0xdf   :  { %270 = vst [vmem:[#allocation2 + $0x198] sm:$0xf0] %v260_v39  ;;  %569 = vrot.lane.b32.xlu0 %v1714_v16, %s1565_s29  ;;  %v224_v15 = vpop.permute.xlu1 %223  ;;  %v1293_v63 = vpack.c.bf16 %v611_v62, %v329_v24  ;;  %v1970_v24 = vld [vmem:[#allocation3] sm:$0xff]  ;;  %v1989_v39 = vld [vmem:[#allocation3 + $0x10] sm:$0xff] }
  0xe0   :  { %v232_v36 = vsel %vm229_vm10, %v224_v15, %v226_v55  ;;  %vm384_vm10 = vcmask 523268  }
  0xe1   :  { %243 = vst [vmem:[#allocation2 + $0x190] sm:$0xf] %v232_v36  ;;  %v257_v2 = vpop.permute.xlu0 %256  ;;  %1294 = vmatprep.subr.bf16.mxu1 %v1293_v63  ;;  %v1998_v36 = vld [vmem:[#allocation3 + $0x18] sm:$0xff] }
  0xe2   :  { %v262_v60 = vsel %vm258_vm15, %v255_v46, %v257_v2  ;;  %274 = vst.msk [vmem:[#allocation2 + $0x1c8] sm:$0xff] %vm49_vm0, %v257_v2  ;;  %1296 = vmatpush1.bf16.msra.mxu1 %v1295_v1 }
  0xe3   :  { %v253_v3 = vpop.permute.xlu1 %252 }
  0xe4   :  { %v261_v4 = vsel %vm258_vm15, %v253_v3, %v255_v46 }
  0xe5   :  { %v247_v5 = vpop.permute.xlu0 %246 }
  0xe6   :  { %v259_v16 = vsel %vm258_vm15, %v247_v5, %v249_v17  ;;  %v654_v6 = vld [vmem:[#allocation2 + $0x198] sm:$0xff]  ;;  %vm488_vm15 = vcmask 97280  }
  0xe7   :  { %269 = vst [vmem:[#allocation2 + $0x190] sm:$0xf0] %v259_v16  ;;  %v1934_v7 = vpop.permute.xlu1 %366  ;;  %v1283_v8 = vpack.c.bf16 %v262_v60, %v654_v6 }
  0xe9   :  { %v365_v9 = vpop.permute.xlu0 %364  ;;  %1284 = vmatprep.subr.bf16.mxu0 %v1283_v8 }
  0xea   :  { %v373_v10 = vsel %vm370_vm14, %v365_v9, %v1934_v7  ;;  %386 = vst.msk [vmem:[#allocation2 + $0x60] sm:$0xff] %vm339_vm11, %v365_v9 }
  0xeb   :  { %v1939_v11 = vpop.permute.xlu1 %391 }
  0xed   :  { %v390_v12 = vpop.permute.xlu0 %389 }
  0xee   :  { %v402_v13 = vsel %vm401_vm1, %v390_v12, %v1939_v11  ;;  %412 = vst.msk [vmem:[#allocation2 + $0x88] sm:$0xff] %vm339_vm11, %v390_v12  ;;  %v653_v14 = vld [vmem:[#allocation2 + $0x190] sm:$0xff] }
  0xef   :  { %v280_v21 = vpop.permute.xlu1 %279  ;;  %v1285_v22 = vpack.c.bf16 %v261_v4, %v653_v14  ;;  %v1297_v25 = vpack.c.bf16 %v402_v13, %v373_v10 }
  0xf0   :  { %300 = vst.msk [vmem:[#allocation2 + $0x1f0] sm:$0xff] %vm49_vm0, %v280_v21 }
  0xf1   :  { %v278_v26 = vpop.permute.xlu0 %277  ;;  %1286 = vmatpush1.bf16.msra.mxu0 %v1285_v22  ;;  %1298 = vmatprep.subr.bf16.mxu1 %v1297_v25  ;;  %v615_v30 = vld [vmem:[#allocation2 + $0x60] sm:$0xff] }
  0xf2   :  { %v289_v27 = vsel %vm287_vm3, %v278_v26, %v280_v21 }
  0xf3   :  { %v286_v28 = vpop.permute.xlu1 %285 }
  0xf4   :  { %303 = vst.msk [vmem:[#allocation2 + $0x218] sm:$0xf] %vm53_vm2, %v286_v28  ;;  %vm1566_vm2 = vmmov 1  }
  0xf5   :  { %v284_v29 = vpop.permute.xlu0 %283  ;;  %v620_v31 = vld [vmem:[#allocation2 + $0x88] sm:$0xff]  ;;  %vm1955_vm5 = vmpackc.low %vm685_vm4, %vm1566_vm2 }
  0xf6   :  { %v291_v32 = vsel %vm287_vm3, %v284_v29, %v286_v28  ;;  %v1299_v33 = vpack.c.bf16 %v620_v31, %v615_v30 }
  0xf7   :  { %302 = vst [vmem:[#allocation2 + $0x210] sm:$0xf] %v291_v32  ;;  %v282_v34 = vpop.permute.xlu1 %281 }
  0xf8   :  { %v290_v35 = vsel %vm287_vm3, %v282_v34, %v284_v29  ;;  %1300 = vmatpush1.bf16.msra.mxu1 %v1299_v33 }
  0xf9   :  { %301 = vst [vmem:[#allocation2 + $0x208] sm:$0xf] %v290_v35  ;;  %v276_v37 = vpop.permute.xlu0 %275 }
  0xfa   :  { %v288_v38 = vsel %vm287_vm3, %v276_v37, %v278_v26 }
  0xfb   :  { %v1950_v20 = vpop.permute.xlu1 %397 }
  0xfd   :  { %v396_v40 = vpop.permute.xlu0 %395 }
  0xfe   :  { %v404_v41 = vsel %vm401_vm1, %v396_v40, %v1950_v20  ;;  %415 = vst.msk [vmem:[#allocation2 + $0xb0] sm:$0xf] %vm344_vm12, %v396_v40  ;;  %v669_v42 = vld [vmem:[#allocation2 + $0x210] sm:$0x1f] }
  0xff   :  { %416 = vst [vmem:[#allocation2 + $0xb8] sm:$0xf] %v404_v41  ;;  %v1959_v43 = vpop.permute.xlu1 %420  ;;  %v1287_v44 = vpack.c.bf16 %v669_v42, %v289_v27 }
 0x100   :  { %v668_v45 = vld [vmem:[#allocation2 + $0x208] sm:$0x1f] }
 0x101   :  { %v419_v47 = vpop.permute.xlu0 %418  ;;  %1289 = vmatprep.subr.msk.bf16.mxu0 %vm1955_vm5, %v1287_v44  ;;  %v1290_v48 = vpack.c.bf16 %v668_v45, %v288_v38 }
 0x102   :  { %v431_v49 = vsel %vm430_vm6, %v419_v47, %v1959_v43  ;;  %441 = vst.msk [vmem:[#allocation2 + $0xb0] sm:$0xf0] %vm381_vm13, %v419_v47 }
 0x103   :  { %442 = vst [vmem:[#allocation2 + $0xb8] sm:$0xf0] %v431_v49  ;;  %v1966_v50 = vpop.permute.xlu1 %426  ;;  %1292 = vmatpush1.bf16.msk.msra.mxu0 %vm1955_vm5, %v1290_v48 }
 0x105   :  { %v425_v53 = vpop.permute.xlu0 %424 }
 0x106   :  { %v433_v54 = vsel %vm430_vm6, %v425_v53, %v1966_v50  ;;  %444 = vst.msk [vmem:[#allocation2 + $0xd8] sm:$0xff] %vm339_vm11, %v425_v53  ;;  %1181 = vmatmul.mubr.msk.f32.vlgmr.msra.gmra.mrb[0].mxu0 %vm171_vm8, %v1970_v24 }
 0x107   :  { %v328_v55 = vpop.permute.xlu1 %327  ;;  %771 = vmatprep.mubr.f32.mxu0 %v1561_v51 }
 0x108   :  { %v332_v17 = vsel %vm49_vm0, %v1907_v18, %v328_v55 }
 0x109   :  { %348 = vst.msk [vmem:[#allocation2 + $0x48] sm:$0xf] %vm347_vm7, %v332_v17  ;;  %v322_v58 = vpop.permute.xlu0 %321  ;;  %v625_v62 = vld [vmem:[#allocation2 + $0xb0] sm:$0xff] }
 0x10a   :  { %v330_v59 = vsel %vm49_vm0, %v1898_v52, %v322_v58  ;;  %v626_v46 = vld [vmem:[#allocation2 + $0xb8] sm:$0xff]  ;;  %1182 = vmatmul.mubr.msk.f32.gmra.mrb[2].mxu0 %vm171_vm8, %v1978_v57  ;;  %vm459_vm0 = vcmask 105472  }
 0x10b   :  { %343 = vst.msk [vmem:[#allocation2 + $0x20] sm:$0xff] %vm342_vm9, %v330_v59  ;;  %v448_v19 = vpop.permute.xlu1 %447  ;;  %v1301_v61 = vpack.c.bf16 %v433_v54, %v626_v46  ;;  %777 = vmatprep.mubr.f32.mxu0 %v1561_v51 }
 0x10c   :  { %470 = vst.msk [vmem:[#allocation2 + $0x100] sm:$0xff] %vm339_vm11, %v448_v19 }
 0x10d   :  { %v363_v18 = vpop.permute.xlu0 %362  ;;  %1302 = vmatprep.subr.bf16.mxu1 %v1301_v61  ;;  %v630_v15 = vld [vmem:[#allocation2 + $0xd8] sm:$0xff] }
 0x10e   :  { %v372_v52 = vsel %vm370_vm14, %v1914_v56, %v363_v18  ;;  %v1303_v63 = vpack.c.bf16 %v630_v15, %v625_v62  ;;  %1183 = vmatmul.mubr.msk.f32.gmra.mrb[4].mxu0 %vm171_vm8, %v1989_v39 }
 0x10f   :  { %385 = vst.msk [vmem:[#allocation2 + $0x48] sm:$0xf0] %vm384_vm10, %v372_v52  ;;  %v454_v0 = vpop.permute.xlu1 %453  ;;  %783 = vmatprep.mubr.f32.mxu0 %v1561_v51 }
 0x110   :  { %473 = vst.msk [vmem:[#allocation2 + $0x128] sm:$0xf] %vm344_vm12, %v454_v0  ;;  %1304 = vmatpush1.bf16.msra.mxu1 %v1303_v63 }
 0x111   :  { %v2001_v1 = vpop.permute.xlu0 %449 }
 0x112   :  { %v460_v56 = vsel %vm459_vm0, %v448_v19, %v2001_v1  ;;  %1184 = vmatmul.mubr.msk.f32.gmra.mrb[6].mxu0 %vm171_vm8, %v1998_v36  ;;  %v607_v4 = vld [vmem:[#allocation2 + $0x20] sm:$0xff] }
 0x113   :  { %v477_v2 = vpop.permute.xlu1 %476  ;;  %1257 = vmatprep.mubr.msk.f32.mxu0 %vm171_vm8, %v1970_v24  ;;  %v635_v29 = vld [vmem:[#allocation2 + $0x100] sm:$0xff] }
 0x114   :  { %499 = vst.msk [vmem:[#allocation2 + $0x128] sm:$0xf0] %vm381_vm13, %v477_v2 }
 0x115   :  { %v2010_v60 = vpop.permute.xlu0 %455 }
 0x116   :  { %v462_v3 = vsel %vm459_vm0, %v454_v0, %v2010_v60  ;;  %v612_v5 = vld [vmem:[#allocation2 + $0x48] sm:$0xff] }
 0x117   :  { %474 = vst [vmem:[#allocation2 + $0x130] sm:$0xf] %v462_v3  ;;  %v369_v16 = vpop.permute.xlu1 %368  ;;  %v2014_v6 = vpack.c.bf16 %v612_v5, %v607_v4 }
 0x118   :  { %v374_v8 = vsel %vm370_vm14, %v1934_v7, %v369_v16  ;;  %vm517_vm14 = vcmask 1014784  }
 0x119   :  { %388 = vst.msk [vmem:[#allocation2 + $0x70] sm:$0xff] %vm342_vm9, %v374_v8  ;;  %v2019_v9 = vpop.permute.xlu0 %478  ;;  %1324 = vmatprep.subr.bf16.mxu0 %v2014_v6 }
 0x11a   :  { %v489_v10 = vsel %vm488_vm15, %v477_v2, %v2019_v9  ;;  %1326 = vmatpush3.bf16.msra.mxu0 %v2014_v6 }
 0x11b   :  { %500 = vst [vmem:[#allocation2 + $0x130] sm:$0xf0] %v489_v10  ;;  %v483_v12 = vpop.permute.xlu1 %482  ;;  %v640_v22 = vld [vmem:[#allocation2 + $0x128] sm:$0xff] }
 0x11c   :  { %502 = vst.msk [vmem:[#allocation2 + $0x150] sm:$0xff] %vm339_vm11, %v483_v12  ;;  %v1307_v31 = vpack.c.bf16 %v640_v22, %v635_v29 }
 0x11d   :  { %v394_v13 = vpop.permute.xlu0 %393 }
 0x11e   :  { %v403_v14 = vsel %vm401_vm1, %v1939_v11, %v394_v13 }
 0x11f   :  { %414 = vst.msk [vmem:[#allocation2 + $0x98] sm:$0xff] %vm342_vm9, %v403_v14  ;;  %v508_v7 = vpop.permute.xlu1 %507 }
 0x120   :  { %v617_v33 = vld [vmem:[#allocation2 + $0x70] sm:$0xff] }
 0x121   :  { %v2029_v21 = vpop.permute.xlu0 %484 }
 0x122   :  { %v491_v25 = vsel %vm488_vm15, %v483_v12, %v2029_v21  ;;  %v641_v26 = vld [vmem:[#allocation2 + $0x130] sm:$0xff] }
 0x123   :  { %v506_v27 = vpop.permute.xlu1 %505  ;;  %v1305_v28 = vpack.c.bf16 %v641_v26, %v460_v56  ;;  %v645_v45 = vld [vmem:[#allocation2 + $0x150] sm:$0xff] }
 0x124   :  { %v518_v30 = vsel %vm517_vm14, %v506_v27, %v508_v7 }
 0x125   :  { %528 = vst.msk [vmem:[#allocation2 + $0x178] sm:$0xff] %vm339_vm11, %v518_v30  ;;  %v510_v11 = vpop.permute.xlu0 %509  ;;  %1306 = vmatprep.subr.bf16.mxu1 %v1305_v28 }
 0x126   :  { %v519_v32 = vsel %vm517_vm14, %v508_v7, %v510_v11  ;;  %530 = vst.msk [vmem:[#allocation2 + $0x188] sm:$0xff] %vm342_vm9, %v510_v11  ;;  %1308 = vmatpush1.bf16.msra.mxu1 %v1307_v31  ;;  %v622_v34 = vld [vmem:[#allocation2 + $0x98] sm:$0xff] }
 0x127   :  { %v423_v35 = vpop.permute.xlu1 %422  ;;  %v2037_v37 = vpack.c.bf16 %v622_v34, %v617_v33  ;;  %v1309_v38 = vpack.c.bf16 %v519_v32, %v491_v25 }
 0x128   :  { %v432_v40 = vsel %vm430_vm6, %v1959_v43, %v423_v35 }
 0x129   :  { %443 = vst.msk [vmem:[#allocation2 + $0xc0] sm:$0xf0] %vm384_vm10, %v432_v40  ;;  %v400_v41 = vpop.permute.xlu0 %399  ;;  %1328 = vmatprep.subr.bf16.mxu0 %v2037_v37  ;;  %1310 = vmatprep.subr.bf16.mxu1 %v1309_v38 }
 0x12a   :  { %v405_v42 = vsel %vm401_vm1, %v1950_v20, %v400_v41  ;;  %1330 = vmatpush3.bf16.msra.mxu0 %v2037_v37  ;;  %vm546_vm1 = vcmask 1006592  }
 0x12b   :  { %417 = vst.msk [vmem:[#allocation2 + $0xc0] sm:$0xf] %vm347_vm7, %v405_v42  ;;  %v514_v44 = vpop.permute.xlu1 %513 }
 0x12c   :  { %v650_v47 = vld [vmem:[#allocation2 + $0x178] sm:$0xff] }
 0x12d   :  { %v429_v48 = vpop.permute.xlu0 %428  ;;  %v1311_v49 = vpack.c.bf16 %v650_v47, %v645_v45  ;;  %v652_v40 = vld [vmem:[#allocation2 + $0x188] sm:$0xff] }
 0x12e   :  { %v434_v43 = vsel %vm430_vm6, %v1966_v50, %v429_v48 }
 0x12f   :  { %446 = vst.msk [vmem:[#allocation2 + $0xe8] sm:$0xff] %vm342_vm9, %v434_v43  ;;  %v537_v53 = vpop.permute.xlu1 %536  ;;  %1312 = vmatpush1.bf16.msra.mxu1 %v1311_v49 }
 0x131   :  { %v516_v54 = vpop.permute.xlu0 %515 }
 0x132   :  { %v521_v55 = vsel %vm517_vm14, %v514_v44, %v516_v54  ;;  %533 = vst.msk [vmem:[#allocation2 + $0x1b0] sm:$0xf] %vm347_vm7, %v516_v54  ;;  %v627_v59 = vld [vmem:[#allocation2 + $0xc0] sm:$0xff] }
 0x133   :  { %532 = vst [vmem:[#allocation2 + $0x1a8] sm:$0xf] %v521_v55  ;;  %v543_v20 = vpop.permute.xlu1 %542 }
 0x135   :  { %v539_v17 = vpop.permute.xlu0 %538 }
 0x136   :  { %v548_v58 = vsel %vm546_vm1, %v537_v53, %v539_v17  ;;  %559 = vst.msk [vmem:[#allocation2 + $0x1b0] sm:$0xf0] %vm384_vm10, %v539_v17  ;;  %v632_v46 = vld [vmem:[#allocation2 + $0xe8] sm:$0xff] }
 0x137   :  { %558 = vst [vmem:[#allocation2 + $0x1a8] sm:$0xf0] %v548_v58  ;;  %v512_v50 = vpop.permute.xlu1 %511  ;;  %v2054_v19 = vpack.c.bf16 %v632_v46, %v627_v59 }
 0x138   :  { %v520_v61 = vsel %vm517_vm14, %v512_v50, %v514_v44 }
 0x139   :  { %531 = vst.msk [vmem:[#allocation2 + $0x1a0] sm:$0xf] %vm344_vm12, %v520_v61  ;;  %v545_v18 = vpop.permute.xlu0 %544  ;;  %1332 = vmatprep.subr.bf16.mxu0 %v2054_v19 }
 0x13a   :  { %v550_v62 = vsel %vm546_vm1, %v543_v20, %v545_v18  ;;  %562 = vst.msk [vmem:[#allocation2 + $0x1d8] sm:$0xff] %vm342_vm9, %v545_v18  ;;  %1334 = vmatpush3.bf16.msra.mxu0 %v2054_v19 }
 0x13b   :  { %v541_v15 = vpop.permute.xlu1 %540 }
 0x13c   :  { %v549_v52 = vsel %vm546_vm1, %v541_v15, %v543_v20 }
 0x13d   :  { %560 = vst.msk [vmem:[#allocation2 + $0x1c8] sm:$0xff] %vm339_vm11, %v549_v52  ;;  %v535_v63 = vpop.permute.xlu0 %534  ;;  %v657_v45 = vld [vmem:[#allocation2 + $0x1b0] sm:$0xff] }
 0x13e   :  { %v547_v0 = vsel %vm546_vm1, %v535_v63, %v537_v53  ;;  %v656_v56 = vld [vmem:[#allocation2 + $0x1a8] sm:$0xff] }
 0x13f   :  { %557 = vst.msk [vmem:[#allocation2 + $0x1a0] sm:$0xf0] %vm381_vm13, %v547_v0  ;;  %v458_v2 = vpop.permute.xlu1 %457  ;;  %v1313_v3 = vpack.c.bf16 %v550_v62, %v656_v56  ;;  %vm575_vm13 = vcmask 998400  }
 0x140   :  { %v463_v4 = vsel %vm459_vm0, %v2010_v60, %v458_v2 }
 0x141   :  { %475 = vst.msk [vmem:[#allocation2 + $0x138] sm:$0xf] %vm347_vm7, %v463_v4  ;;  %v452_v5 = vpop.permute.xlu0 %451  ;;  %1314 = vmatprep.subr.bf16.mxu1 %v1313_v3  ;;  %v662_v41 = vld [vmem:[#allocation2 + $0x1d8] sm:$0xff] }
 0x142   :  { %v461_v16 = vsel %vm459_vm0, %v2001_v1, %v452_v5  ;;  %v1343_v48 = vpack.c.bf16 %v662_v41, %v657_v45 }
 0x143   :  { %472 = vst.msk [vmem:[#allocation2 + $0x110] sm:$0xff] %vm342_vm9, %v461_v16  ;;  %v566_v8 = vpop.permute.xlu1 %565 }
 0x144   :  { %v660_v14 = vld [vmem:[#allocation2 + $0x1c8] sm:$0xff] }
 0x145   :  { %v481_v10 = vpop.permute.xlu0 %480 }
 0x146   :  { %v490_v12 = vsel %vm488_vm15, %v2019_v9, %v481_v10  ;;  %v655_v13 = vld [vmem:[#allocation2 + $0x1a0] sm:$0xff] }
 0x147   :  { %501 = vst.msk [vmem:[#allocation2 + $0x138] sm:$0xf0] %vm384_vm10, %v490_v12  ;;  %v572_v7 = vpop.permute.xlu1 %571  ;;  %v1315_v60 = vpack.c.bf16 %v660_v14, %v655_v13 }
 0x149   :  { %v568_v22 = vpop.permute.xlu0 %567  ;;  %1316 = vmatpush1.bf16.msra.mxu1 %v1315_v60 }
 0x14a   :  { %v577_v25 = vsel %vm575_vm13, %v566_v8, %v568_v22  ;;  %588 = vst.msk [vmem:[#allocation2 + $0x200] sm:$0xff] %vm342_vm9, %v568_v22  ;;  %v637_v28 = vld [vmem:[#allocation2 + $0x110] sm:$0xff] }
 0x14b   :  { %v564_v1 = vpop.permute.xlu1 %563 }
 0x14c   :  { %v576_v26 = vsel %vm575_vm13, %v564_v1, %v566_v8 }
 0x14d   :  { %586 = vst.msk [vmem:[#allocation2 + $0x1f0] sm:$0xff] %vm339_vm11, %v576_v26  ;;  %v574_v27 = vpop.permute.xlu0 %573 }
 0x14e   :  { %v579_v9 = vsel %vm575_vm13, %v572_v7, %v574_v27  ;;  %591 = vst.msk [vmem:[#allocation2 + $0x228] sm:$0xf] %vm347_vm7, %v574_v27  ;;  %v642_v29 = vld [vmem:[#allocation2 + $0x138] sm:$0xff] }
 0x14f   :  { %590 = vst [vmem:[#allocation2 + $0x220] sm:$0xf] %v579_v9  ;;  %v487_v30 = vpop.permute.xlu1 %486  ;;  %v1335_v31 = vpack.c.bf16 %v642_v29, %v637_v28  ;;  %v979_v28 = vld [vmem:[%s2227_s5] sm:$0xff] }
 0x150   :  { %v492_v11 = vsel %vm488_vm15, %v2029_v21, %v487_v30 }
 0x151   :  { %504 = vst.msk [vmem:[#allocation2 + $0x160] sm:$0xff] %vm342_vm9, %v492_v11  ;;  %v570_v32 = vpop.permute.xlu0 %569  ;;  %1336 = vmatprep.subr.bf16.mxu0 %v1335_v31  ;;  %v667_v43 = vld [vmem:[#allocation2 + $0x200] sm:$0xff] }
 0x152   :  { %v578_v33 = vsel %vm575_vm13, %v570_v32, %v572_v7  ;;  %1338 = vmatpush3.bf16.msra.mxu0 %v1335_v31 }
 0x153   :  { %589 = vst.msk [vmem:[#allocation2 + $0x218] sm:$0xf] %vm344_vm12, %v578_v33 }
 0x154   :  { %v665_v44 = vld [vmem:[#allocation2 + $0x1f0] sm:$0xff] }
 0x155   :  { %v672_v49 = vld [vmem:[#allocation2 + $0x228] sm:$0x1f] }
 0x156   :  { %v671_v34 = vld [vmem:[#allocation2 + $0x220] sm:$0x1f]  ;;  %v1347_v53 = vpack.c.bf16 %v672_v49, %v667_v43 }
 0x157   :  { %v1317_v35 = vpack.c.bf16 %v671_v34, %v577_v25 }
 0x158   :  { %v647_v38 = vld [vmem:[#allocation2 + $0x160] sm:$0xff] }
 0x159   :  { %1319 = vmatprep.subr.msk.bf16.mxu1 %vm1955_vm5, %v1317_v35  ;;  %v1339_v42 = vpack.c.bf16 %v652_v40, %v647_v38 }
 0x15a   :  { %v670_v21 = vld [vmem:[#allocation2 + $0x218] sm:$0x1f] }
 0x15b   :  { %1340 = vmatprep.subr.bf16.mxu0 %v1339_v42  ;;  %v1320_v47 = vpack.c.bf16 %v670_v21, %v665_v44 }
 0x15c   :  { %1342 = vmatpush3.bf16.msra.mxu0 %v1339_v42 }
 0x15d   :  { %1322 = vmatpush1.bf16.msk.msra.mxu1 %vm1955_vm5, %v1320_v47  ;;  %1344 = vmatprep.subr.bf16.mxu0 %v1343_v48 }
 0x15e   :  { %1353 = vmatprep.subr.bf16.mxu1 %v2014_v6 }
 0x160   :  { %1187 = vmatmul.mubr.msk.f32.vlgmr.msra.gmra.mrb[0].mxu1 %vm171_vm8, %v1970_v24  ;;  %1346 = vmatpush3.bf16.msra.mxu0 %v1343_v48  ;;  %v969_v24 = vld [vmem:[%s2225_s3] sm:$0xff] }
 0x161   :  { %1360 = vmatpush3.bf16.msra.mxu1 %v2014_v6  ;;  %1349 = vmatprep.subr.msk.bf16.mxu0 %vm1955_vm5, %v1347_v53 }
 0x162   :  { %1354 = vmatprep.subr.bf16.mxu1 %v2037_v37  ;;  %860 = vmatprep.mubr.f32.mxu1 %v1561_v51 }
 0x164   :  { %1188 = vmatmul.mubr.msk.f32.gmra.mrb[2].mxu1 %vm171_vm8, %v1978_v57  ;;  %1352 = vmatpush3.bf16.msk.msra.mxu0 %vm1955_vm5, %v1347_v53 }
 0x165   :  { %1361 = vmatpush3.bf16.msra.mxu1 %v2037_v37  ;;  %866 = vmatprep.mubr.f32.mxu1 %v1561_v51  ;;  %v975_v37 = vld [vmem:[%s2226_s4 + $0x8] sm:$0xff] }
 0x166   :  { %1355 = vmatprep.subr.bf16.mxu1 %v2054_v19 }
 0x167   :  { %1258 = vmatmul.mubr.msk.f32.vlgmr.msra.gmra.mrb[8].mxu0 %vm171_vm8, %v1978_v57  ;;  %v965_v57 = vld [vmem:[%s2224_s2 + $0x8] sm:$0xff] }
 0x168   :  { %1189 = vmatmul.mubr.msk.f32.gmra.mrb[4].mxu1 %vm171_vm8, %v1989_v39  ;;  %v985_v6 = vmul.f32 %v970_v23, %v965_v57  ;;  %v1025_v59 = vmul.f32 %v975_v37, %v965_v57  ;;  %v972_v23 = vld [vmem:[%s2225_s3 + $0x18] sm:$0xff] }
 0x169   :  { %1362 = vmatpush3.bf16.msra.mxu1 %v2054_v19  ;;  %872 = vmatprep.mubr.f32.mxu1 %v1561_v51  ;;  %v964_v51 = vld [vmem:[%s2224_s2] sm:$0xff]  ;;  %v977_v37 = vld [vmem:[%s2226_s4 + $0x18] sm:$0xff] }
 0x16a   :  { %1356 = vmatprep.subr.bf16.mxu1 %v1335_v31 }
 0x16c   :  { %1190 = vmatmul.mubr.msk.f32.gmra.mrb[6].mxu1 %vm171_vm8, %v1998_v36 }
 0x16d   :  { %1363 = vmatpush3.bf16.msra.mxu1 %v1335_v31  ;;  %1260 = vmatprep.mubr.msk.f32.mxu1 %vm171_vm8, %v1989_v39  ;;  %v984_v39 = vmul.f32 %v969_v24, %v964_v51  ;;  %v980_v31 = vld [vmem:[%s2227_s5 + $0x8] sm:$0xff]  ;;  %v971_v24 = vld [vmem:[%s2225_s3 + $0x10] sm:$0xff] }
 0x16e   :  { %1357 = vmatprep.subr.bf16.mxu1 %v1339_v42 }
 0x171   :  { %1364 = vmatpush3.bf16.msra.mxu1 %v1339_v42 }
 0x172   :  { %1358 = vmatprep.subr.bf16.mxu1 %v1343_v48 }
 0x175   :  { %1365 = vmatpush3.bf16.msra.mxu1 %v1343_v48 }
 0x176   :  { %1359 = vmatprep.subr.msk.bf16.mxu1 %vm1955_vm5, %v1347_v53 }
 0x179   :  { %1366 = vmatpush3.bf16.msk.msra.mxu1 %vm1955_vm5, %v1347_v53 }
 0x17c   :  { %1261 = vmatmul.mubr.msk.f32.vlgmr.msra.gmra.mrb[8].mxu1 %vm171_vm8, %v1998_v36  ;;  %v974_v36 = vld [vmem:[%s2226_s4] sm:$0xff] }
 0x17d   :  { %v1024_v17 = vmul.f32 %v974_v36, %v964_v51  ;;  %v976_v36 = vld [vmem:[%s2226_s4 + $0x10] sm:$0xff] }
 0x1d9   :  { %v767_v54 = vpop.f32.mrb[0].mxu0 }
 0x1da   :  { %v989_v55 = vadd.f32 %v984_v39, %v767_v54  ;;  %v769_v20 = vpop.f32.mrb[1].mxu0 }
 0x1db   :  { %v990_v58 = vadd.f32 %v985_v6, %v769_v20 }
 0x1dc   :  { %v1196_v46 = vmul.f32 -1.442695, %v989_v55 }
 0x1dd   :  { %v1197_v50 = vmul.f32 -1.442695, %v990_v58  ;;  %v773_v19 = vpop.f32.mrb[2].mxu0  ;;  %v2173_v58 = vld [vmem:[%s2224_s2 + $0x20] sm:$0xff] }
 0x1de   :  { %1392 = vpow2.f32 %v1196_v46  ;;  %v1029_v61 = vadd.f32 %v1024_v17, %v773_v19  ;;  %v775_v18 = vpop.f32.mrb[3].mxu0  ;;  %v973_v19 = vld [vmem:[%s2225_s3 + $0x20] sm:$0xff] }
 0x1df   :  { %1394 = vpow2.f32 %v1197_v50  ;;  %v1030_v62 = vadd.f32 %v1025_v59, %v775_v18  ;;  %v978_v59 = vld [vmem:[%s2226_s4 + $0x20] sm:$0xff] }
 0x1e0   :  { %v1201_v15 = vmul.f32 -1.442695, %v1029_v61 }
 0x1e1   :  { %v1202_v52 = vmul.f32 -1.442695, %v1030_v62  ;;  %v779_v63 = vpop.f32.mrb[4].mxu0 }
 0x1e2   :  { %1396 = vpow2.f32 %v1201_v15  ;;  %v781_v0 = vpop.f32.mrb[5].mxu0  ;;  %v1028_v15 = vmul.f32 %v978_v59, %v2173_v58  ;;  %v983_v59 = vld [vmem:[%s2227_s5 + $0x20] sm:$0xff] }
 0x1e3   :  { %1398 = vpow2.f32 %v1202_v52 }
 0x1e4   :  { %1400 = vtanh.f32 %v779_v63 }
 0x1e5   :  { %v785_v56 = vpop.f32.mrb[6].mxu0  ;;  %1402 = vtanh.f32 %v781_v0  ;;  %v988_v0 = vmul.f32 %v973_v19, %v2173_v58 }
 0x1e6   :  { %v787_v2 = vpop.f32.mrb[7].mxu0 }
 0x1e8   :  { %v1393_v3 = vpop.eup %1392 }
 0x1e9   :  { %v1395_v4 = vpop.eup %1394  ;;  %v1009_v5 = vadd.f32 1.0, %v1393_v3 }
 0x1ea   :  { %v1010_v16 = vadd.f32 1.0, %v1395_v4 }
 0x1eb   :  { %1404 = vrcp.f32 %v1009_v5 }
 0x1ec   :  { %v1397_v8 = vpop.eup %1396  ;;  %1406 = vrcp.f32 %v1010_v16 }
 0x1ed   :  { %v1399_v10 = vpop.eup %1398  ;;  %v1049_v12 = vadd.f32 1.0, %v1397_v8 }
 0x1ee   :  { %v1050_v13 = vadd.f32 1.0, %v1399_v10  ;;  %v1401_v14 = vpop.eup %1400 }
 0x1ef   :  { %1408 = vrcp.f32 %v1049_v12  ;;  %v1403_v7 = vpop.eup %1402 }
 0x1f0   :  { %1410 = vrcp.f32 %v1050_v13 }
 0x1f5   :  { %v1405_v60 = vpop.eup %1404 }
 0x1f6   :  { %v1407_v22 = vpop.eup %1406  ;;  %v1074_v25 = vmul.f32 %v1405_v60, %v1401_v14 }
 0x1f7   :  { %v1075_v1 = vmul.f32 %v1407_v22, %v1403_v7 }
 0x1f9   :  { %v1409_v26 = vpop.eup %1408 }
 0x1fa   :  { %v1411_v27 = vpop.eup %1410  ;;  %v1064_v9 = vmul.f32 %v1409_v26, %v964_v51  ;;  %v2148_v51 = vld [vmem:[%s2224_s2 + $0x10] sm:$0xff] }
 0x1fb   :  { %v1065_v29 = vmul.f32 %v1411_v27, %v965_v57  ;;  %v2156_v57 = vld [vmem:[%s2224_s2 + $0x18] sm:$0xff]  ;;  %v986_v39 = vmul.f32 %v971_v24, %v2148_v51  ;;  %v1026_v17 = vmul.f32 %v976_v36, %v2148_v51 }
 0x1fc   :  { %v1079_v30 = vadd.f32 %v1074_v25, %v1064_v9  ;;  %v987_v6 = vmul.f32 %v972_v23, %v2156_v57  ;;  %v1027_v50 = vmul.f32 %v977_v37, %v2156_v57 }
 0x1fd   :  { %v1080_v11 = vadd.f32 %v1075_v1, %v1065_v29 }
 0x1fe   :  { %v1084_v32 = vmul.f32 %v1079_v30, %v979_v28  ;;  %1139 = vst [vmem:[#allocation7] sm:$0xff] %v1079_v30 }
 0x1ff   :  { %v1085_v33 = vmul.f32 %v1080_v11, %v980_v31  ;;  %1140 = vst [vmem:[#allocation7 + $0x8] sm:$0xff] %v1080_v11 }
 0x200   :  { %v1089_v34 = vadd.f32 %v1084_v32, %v785_v56 }
 0x201   :  { %v1090_v35 = vadd.f32 %v1085_v33, %v787_v2 }
 0x202   :  { %v1206_v38 = vmul.f32 -1.442695, %v1089_v34 }
 0x203   :  { %v1207_v40 = vmul.f32 -1.442695, %v1090_v35 }
 0x204   :  { %1412 = vpow2.f32 %v1206_v38 }
 0x205   :  { %1414 = vpow2.f32 %v1207_v40 }
 0x206   :  { %1416 = vtanh.f32 %v1079_v30 }
 0x207   :  { %1418 = vtanh.f32 %v1080_v11 }
 0x20e   :  { %v1413_v41 = vpop.eup %1412 }
 0x20f   :  { %v1415_v42 = vpop.eup %1414  ;;  %v1109_v44 = vadd.f32 1.0, %v1413_v41 }
 0x210   :  { %v1110_v21 = vadd.f32 1.0, %v1415_v42  ;;  %v1417_v45 = vpop.eup %1416 }
 0x211   :  { %1420 = vrcp.f32 %v1109_v44  ;;  %v1419_v47 = vpop.eup %1418 }
 0x212   :  { %1422 = vrcp.f32 %v1110_v21 }
 0x21b   :  { %v1421_v48 = vpop.eup %1420 }
 0x21c   :  { %v1423_v49 = vpop.eup %1422  ;;  %v1129_v43 = vmul.f32 %v1421_v48, %v1417_v45  ;;  %v981_v48 = vld [vmem:[%s2227_s5 + $0x10] sm:$0xff] }
 0x21d   :  { %v1130_v53 = vmul.f32 %v1423_v49, %v1419_v47 }
 0x21e   :  { %1134 = vst [vmem:[#allocation6] sm:$0xff] %v1129_v43 }
 0x21f   :  { %1135 = vst [vmem:[#allocation6 + $0x8] sm:$0xff] %v1130_v53  ;;  %v982_v53 = vld [vmem:[%s2227_s5 + $0x18] sm:$0xff] }
 0x233   :  { %v856_v54 = vpop.f32.mrb[0].mxu1 }
 0x234   :  { %v991_v55 = vadd.f32 %v986_v39, %v856_v54  ;;  %v858_v20 = vpop.f32.mrb[1].mxu1 }
 0x235   :  { %v992_v46 = vadd.f32 %v987_v6, %v858_v20 }
 0x236   :  { %v1198_v61 = vmul.f32 -1.442695, %v991_v55 }
 0x237   :  { %v1199_v18 = vmul.f32 -1.442695, %v992_v46  ;;  %v862_v62 = vpop.f32.mrb[2].mxu1 }
 0x238   :  { %1424 = vpow2.f32 %v1198_v61  ;;  %v1031_v52 = vadd.f32 %v1026_v17, %v862_v62  ;;  %v864_v63 = vpop.f32.mrb[3].mxu1 }
 0x239   :  { %1426 = vpow2.f32 %v1199_v18  ;;  %v1032_v56 = vadd.f32 %v1027_v50, %v864_v63 }
 0x23a   :  { %v1203_v2 = vmul.f32 -1.442695, %v1031_v52  ;;  %v1259_v3 = vpop.f32.mrb[8].mxu0 }
 0x23b   :  { %v1204_v4 = vmul.f32 -1.442695, %v1032_v56  ;;  %v1033_v5 = vadd.f32 %v1259_v3, %v1028_v15  ;;  %v945_v16 = vpop.f32.mrb[9].mxu0  ;;  %v868_v8 = vpop.f32.mrb[4].mxu1 }
 0x23c   :  { %1428 = vpow2.f32 %v1203_v2  ;;  %v993_v10 = vadd.f32 %v988_v0, %v945_v16  ;;  %v870_v12 = vpop.f32.mrb[5].mxu1 }
 0x23d   :  { %1430 = vpow2.f32 %v1204_v4  ;;  %v1205_v13 = vmul.f32 -1.442695, %v1033_v5 }
 0x23e   :  { %v1200_v14 = vmul.f32 -1.442695, %v993_v10 }
 0x23f   :  { %1432 = vpow2.f32 %v1205_v13  ;;  %v874_v7 = vpop.f32.mrb[6].mxu1 }
 0x240   :  { %1434 = vpow2.f32 %v1200_v14  ;;  %v876_v60 = vpop.f32.mrb[7].mxu1 }
 0x241   :  { %1436 = vtanh.f32 %v868_v8 }
 0x242   :  { %v1425_v22 = vpop.eup %1424  ;;  %1438 = vtanh.f32 %v870_v12 }
 0x243   :  { %v1427_v25 = vpop.eup %1426  ;;  %v1011_v1 = vadd.f32 1.0, %v1425_v22 }
 0x244   :  { %v1012_v26 = vadd.f32 1.0, %v1427_v25 }
 0x245   :  { %1440 = vrcp.f32 %v1011_v1 }
 0x246   :  { %v1429_v27 = vpop.eup %1428  ;;  %1442 = vrcp.f32 %v1012_v26 }
 0x247   :  { %v1431_v9 = vpop.eup %1430  ;;  %v1051_v28 = vadd.f32 1.0, %v1429_v27 }
 0x248   :  { %v1052_v29 = vadd.f32 1.0, %v1431_v9 }
 0x249   :  { %v1433_v30 = vpop.eup %1432  ;;  %1444 = vrcp.f32 %v1051_v28 }
 0x24a   :  { %v1435_v31 = vpop.eup %1434  ;;  %1446 = vrcp.f32 %v1052_v29  ;;  %v1053_v11 = vadd.f32 1.0, %v1433_v30 }
 0x24b   :  { %v1013_v32 = vadd.f32 1.0, %v1435_v31  ;;  %v1437_v33 = vpop.eup %1436 }
 0x24c   :  { %1448 = vrcp.f32 %v1053_v11  ;;  %v1439_v34 = vpop.eup %1438 }
 0x24d   :  { %1450 = vrcp.f32 %v1013_v32 }
 0x24f   :  { %v1441_v35 = vpop.eup %1440  ;;  %v1262_v38 = vpop.f32.mrb[8].mxu1 }
 0x250   :  { %v1443_v40 = vpop.eup %1442  ;;  %v1076_v41 = vmul.f32 %v1441_v35, %v1437_v33  ;;  %v955_v42 = vpop.f32.mrb[9].mxu1 }
 0x251   :  { %v1077_v44 = vmul.f32 %v1443_v40, %v1439_v34  ;;  %1452 = vtanh.f32 %v955_v42 }
 0x253   :  { %v1445_v21 = vpop.eup %1444 }
 0x254   :  { %v1447_v45 = vpop.eup %1446  ;;  %v1066_v47 = vmul.f32 %v1445_v21, %v2148_v51 }
 0x255   :  { %v1067_v49 = vmul.f32 %v1447_v45, %v2156_v57 }
 0x256   :  { %v1081_v43 = vadd.f32 %v1076_v41, %v1066_v47  ;;  %v1449_v24 = vpop.eup %1448 }
 0x257   :  { %v1082_v23 = vadd.f32 %v1077_v44, %v1067_v49  ;;  %v1451_v6 = vpop.eup %1450  ;;  %v1068_v51 = vmul.f32 %v1449_v24, %v2173_v58 }
 0x258   :  { %v1086_v39 = vmul.f32 %v1081_v43, %v981_v48  ;;  %1141 = vst [vmem:[#allocation7 + $0x10] sm:$0xff] %v1081_v43 }
 0x259   :  { %v1087_v36 = vmul.f32 %v1082_v23, %v982_v53  ;;  %1142 = vst [vmem:[#allocation7 + $0x18] sm:$0xff] %v1082_v23 }
 0x25a   :  { %v1091_v37 = vadd.f32 %v1086_v39, %v874_v7 }
 0x25b   :  { %v1453_v54 = vpop.eup %1452  ;;  %v1092_v55 = vadd.f32 %v1087_v36, %v876_v60 }
 0x25c   :  { %v1208_v57 = vmul.f32 -1.442695, %v1091_v37  ;;  %v1078_v20 = vmul.f32 %v1453_v54, %v1451_v6 }
 0x25d   :  { %v1209_v17 = vmul.f32 -1.442695, %v1092_v55 }
 0x25e   :  { %1454 = vpow2.f32 %v1208_v57  ;;  %v1083_v46 = vadd.f32 %v1078_v20, %v1068_v51 }
 0x25f   :  { %1456 = vpow2.f32 %v1209_v17 }
 0x260   :  { %v1088_v50 = vmul.f32 %v1083_v46, %v983_v59  ;;  %1143 = vst.msk [vmem:[#allocation7 + $0x20] sm:$0xff] %vm342_vm9, %v1083_v46 }
 0x261   :  { %1505 = shalt.err (!%p1502_p12)
}
 0x262   :  { %s1506_s23 = scalar_lea.hbm %s2229_s7, 640 }
 0x263   :  { %p1507_p13 = scmp.ne.s32.totalorder %s2229_s7, %s1506_s23  ;;  %p1510_p0 = scmp.lt.u32.totalorder %s1506_s23, %s2229_s7 }
 0x265   :  { %p1512_p1 = pnand %p1510_p0, %p1507_p13 }
 0x267   :  { %1515 = shalt.err (!%p1512_p1)
}
 0x268   :  { %1163 = dma.vmem_to_hbm [thread:$0]  %s1161_s18, 640, %s2229_s7, [#allocation8]   ;;  %v1093_v58 = vadd.f32 %v1262_v38, %v1088_v50  ;;  %v1455_v61 = vpop.eup %1454 }
 0x269   :  { %v1457_v18 = vpop.eup %1456  ;;  %v1111_v62 = vadd.f32 1.0, %v1455_v61  ;;  %s1568_s7 = smov [#allocation6]  }
 0x26a   :  { %v1210_v19 = vmul.f32 -1.442695, %v1093_v58  ;;  %v1112_v15 = vadd.f32 1.0, %v1457_v18  ;;  %s1150_s28 = sshll.u32 %s1568_s7, 4  ;;  %s1151_s28 = int_to_ptr.vmem [resolvable:$true] %s1150_s28 }
 0x26b   :  { %s1516_s29 = scalar_lea.vmem %s1151_s28, 640  ;;  %p1521_p3 = scmp.lt.s32.totalorder %s1151_s28, %s1151_s28 }
 0x26c   :  { %1458 = vpow2.f32 %v1210_v19  ;;  %p1517_p2 = scmp.ne.s32.totalorder %s1151_s28, %s1516_s29  ;;  %p1522_p4 = scmp.lt.s32.totalorder %s1516_s29, %s1516_s29 }
 0x26d   :  { %1460 = vtanh.f32 %v1081_v43 }
 0x26e   :  { %1462 = vtanh.f32 %v1082_v23  ;;  %p1523_p5 = por %p1522_p4, %p1521_p3 }
 0x26f   :  { %1464 = vrcp.f32 %v1111_v62 }
 0x270   :  { %1466 = vrcp.f32 %v1112_v15  ;;  %p1524_p6 = pnand %p1523_p5, %p1517_p2 }
 0x271   :  { %1468 = vtanh.f32 %v1083_v46 }
 0x276   :  { %v1459_v52 = vpop.eup %1458 }
 0x277   :  { %v1113_v63 = vadd.f32 1.0, %v1459_v52  ;;  %v1461_v0 = vpop.eup %1460 }
 0x278   :  { %v1463_v56 = vpop.eup %1462 }
 0x279   :  { %1470 = vrcp.f32 %v1113_v63  ;;  %v1465_v2 = vpop.eup %1464 }
 0x27a   :  { %v1467_v3 = vpop.eup %1466  ;;  %v1131_v4 = vmul.f32 %v1465_v2, %v1461_v0 }
 0x27b   :  { %v1132_v5 = vmul.f32 %v1467_v3, %v1463_v56  ;;  %v1469_v16 = vpop.eup %1468 }
 0x27c   :  { %1136 = vst [vmem:[#allocation6 + $0x10] sm:$0xff] %v1131_v4 }
 0x27d   :  { %1137 = vst [vmem:[#allocation6 + $0x18] sm:$0xff] %v1132_v5 }
 0x283   :  { %v1471_v8 = vpop.eup %1470 }
 0x284   :  { %v1133_v10 = vmul.f32 %v1471_v8, %v1469_v16 }
 0x286   :  { %1138 = vst.msk [vmem:[#allocation6 + $0x20] sm:$0xff] %vm342_vm9, %v1133_v10 }
 0x287   :  { %1527 = shalt.err (!%p1524_p6)
}
 0x288   :  { %s1528_s9 = scalar_lea.hbm %s2228_s6, 640 }
 0x289   :  { %p1529_p7 = scmp.ne.s32.totalorder %s2228_s6, %s1528_s9  ;;  %p1532_p8 = scmp.lt.u32.totalorder %s1528_s9, %s2228_s6 }
 0x28b   :  { %p1534_p9 = pnand %p1532_p8, %p1529_p7 }
 0x28d   :  { %1537 = shalt.err (!%p1534_p9)
}
 0x28e   :  { %1153 = dma.vmem_to_hbm [thread:$0]  %s1151_s28, 640, %s2228_s6, [#allocation5]  }
 0x28f   :  { %1540 = dma.done.wait [#allocation5], 640  }
 0x290   :  { %1541 = vsyncadd [#allocation5], 4294966656 }
 0x291   :  { %1542 = dma.done.wait [#allocation8], 640  }
 0x292   :  { %1543 = vsyncadd [#allocation8], 4294966656 }
 0x293   :  { %1170 = vsyncpa [#allocation4], 1 }
 0x294   :  { %1171 = vsyncpa [#allocation5], 1 }
 0x295   :  { %1172 = vsyncpa [#allocation8], 1 }

</bundles_post_ra>
